<compile_context>
chip_gen: v7x
topology: tpu7x:2x2x1
jax: 0.10.0
libtpu: 0.0.40
codegen_flags: <defaults>
</compile_context>

<pallas_src>
import functools

import jax
import jax.numpy as jnp
from jax.experimental import pallas as pl
from jax.experimental.pallas import tpu as pltpu

IN_FEATURES = 2048
BN_EPS = 1e-5


def _round_up(x, m):
    return ((x + m - 1) // m) * m


def _sublane(itemsize):
    # Sub-32-bit dtypes pack along sublanes.
    return {4: 8, 2: 16, 1: 32}.get(int(itemsize), 8)


def _phys_bytes_2d(rows, cols, itemsize):
    """Physical VMEM bytes of a 2-D buffer after (sublane, lane) tiling."""
    return _round_up(rows, _sublane(itemsize)) * _round_up(cols, 128) * itemsize


def _vmem_budget_bytes():
    """Per-generation VMEM budget (~3/4 of physical capacity)."""
    try:
        cap = int(pltpu.get_tpu_info().vmem_capacity_bytes)
    except Exception:
        cap = 64 << 20  # conservative: v7x per-TensorCore VMEM
    return (cap * 3) // 4   # 64 MiB -> 48 MiB (v7x); 128 MiB -> 96 MiB (v5e/v6e)


@functools.lru_cache(maxsize=1)
def _supports_buffered_1():
    """Probe (once) whether pipeline_mode=pl.Buffered(1) compiles and runs."""
    try:
        spec = pl.BlockSpec((8, 128), lambda i: (0, 0),
                            pipeline_mode=pl.Buffered(1))

        def _k(a_ref, o_ref):
            o_ref[...] = a_ref[...] + 1.0

        y = pl.pallas_call(
            _k,
            out_shape=jax.ShapeDtypeStruct((8, 128), jnp.float32),
            grid=(2,),
            in_specs=[spec],
            out_specs=pl.BlockSpec((8, 128), lambda i: (0, 0)),
        )(jnp.zeros((8, 128), jnp.float32))
        jax.block_until_ready(y)
        return True
    except Exception:
        return False


def classifier_kernel(x_ref, w1_ref, fb1_ref, s1_ref,
                      w2_ref, fb2_ref, s2_ref,
                      wc_ref, bc_ref, out_ref):
    # x_ref: (TN, 2048) pooled features, lane-dense along the feature axis.
    x = x_ref[...]

    # linear1 + bn1(eval, folded into s1/fb1) + relu   (dropout = identity)
    h1 = jnp.dot(x, w1_ref[...], preferred_element_type=jnp.float32)
    h1 = jnp.maximum(h1 * s1_ref[...] + fb1_ref[...], 0.0)        # (TN, Up)

    # linear2 + bn2(eval) + relu                       (dropout = identity)
    h2 = jnp.dot(h1.astype(w2_ref.dtype), w2_ref[...],
                 preferred_element_type=jnp.float32)
    h2 = jnp.maximum(h2 * s2_ref[...] + fb2_ref[...], 0.0)        # (TN, Up)

    # grad_reverse is identity in forward; final classifier linear
    logits = jnp.dot(h2.astype(wc_ref.dtype), wc_ref[...],
                     preferred_element_type=jnp.float32)
    out_ref[...] = (logits + bc_ref[...]).astype(out_ref.dtype)   # (TN, NCp)


def _choose_tile_n(n, c, nc_p, x_itemsize, vmem_budget, w_resident_bytes):
    """Biggest N-tile whose double-buffered x/out tiles + resident weights fit."""
    if n <= 8:
        return n                          # whole array in one (full-dim) block
    headroom = 4 << 20                    # Mosaic internal scratch etc.
    per_row = 2 * (_round_up(c, 128) * x_itemsize + nc_p * 4)  # 2 bufs x+out
    avail = max(vmem_budget - w_resident_bytes - headroom, 2 << 20)
    tn = avail // per_row
    # Keep >= ~4 grid steps when N allows it so v7x's 2 TensorCores both get
    # work and DMA/compute overlap exists (harmless on single-TC v5e/v6e).
    tn = min(tn, _round_up(max(1, -(-n // 4)), 8))
    tn = max(8, (tn // 8) * 8)            # sublane-aligned when actually tiling
    if tn >= n:
        return n
    return tn


def classifier_forward(rois_nchw, params, *, tile_n=None):
    """rois_nchw: (N, 2048, H, W). Returns logits (N, num_classes)."""
    n, c, h, w = rois_nchw.shape
    assert c == IN_FEATURES

    # AdaptiveAvgPool2d((1,1)) + flatten, hoisted to XLA so the Pallas kernel
    # sees a lane-dense (N, 2048) block.  x is still read from HBM exactly
    # once; the pooled intermediate is negligible.
    pooled = jnp.mean(rois_nchw.astype(jnp.float32), axis=(2, 3))
    x = pooled.astype(rois_nchw.dtype)    # keep a bf16 stream if producer is bf16

    (w1, fb1, s1, w2, fb2, s2, wc, bc) = params
    unit = w1.shape[1]
    num_classes = wc.shape[1]

    # Pad feature dims to lane-dense multiples of 128.  Padded columns carry
    # zero weight / zero scale / zero fused-bias, so they stay exactly zero
    # through relu and contribute nothing downstream.
    unit_p = _round_up(unit, 128)
    nc_p = _round_up(num_classes, 128)
    du, dc = unit_p - unit, nc_p - num_classes

    compute_dtype = jnp.bfloat16 if rois_nchw.dtype == jnp.bfloat16 else jnp.float32
    w1p = jnp.pad(w1, ((0, 0), (0, du))).astype(compute_dtype)
    w2p = jnp.pad(w2, ((0, du), (0, du))).astype(compute_dtype)
    wcp = jnp.pad(wc, ((0, du), (0, dc))).astype(compute_dtype)
    fb1p = jnp.pad(fb1, ((0, 0), (0, du)))
    s1p = jnp.pad(s1, ((0, 0), (0, du)))
    fb2p = jnp.pad(fb2, ((0, 0), (0, du)))
    s2p = jnp.pad(s2, ((0, 0), (0, du)))
    bcp = jnp.pad(bc, ((0, 0), (0, dc)))
    weights = (w1p, fb1p, s1p, w2p, fb2p, s2p, wcp, bcp)

    x_itemsize = jnp.dtype(x.dtype).itemsize

    # Physical (tile-padded) VMEM bytes of the resident weights/scales.
    w_phys = sum(_phys_bytes_2d(a.shape[0], a.shape[1],
                                jnp.dtype(a.dtype).itemsize) for a in weights)
    single_buffer_weights = _supports_buffered_1()
    w_resident = (1 if single_buffer_weights else 2) * w_phys

    budget = _vmem_budget_bytes()
    tn = tile_n if tile_n is not None else _choose_tile_n(
        n, c, nc_p, x_itemsize, budget, w_resident)
    grid = (pl.cdiv(n, tn),)

    # Physical-byte VMEM need for the declared limit (double-buffered tiles).
    tn_x_phys = _round_up(tn, _sublane(x_itemsize))
    tn_o_phys = _round_up(tn, 8)
    need = (2 * (tn_x_phys * _round_up(c, 128) * x_itemsize
                 + tn_o_phys * nc_p * 4)
            + w_resident + (4 << 20))
    vmem_limit = int(min(max(need, 16 << 20), budget))

    cost = pl.CostEstimate(
        flops=int(2 * n * (c * unit_p + unit_p * unit_p + unit_p * nc_p)),
        transcendentals=0,
        bytes_accessed=int(n * c * x_itemsize
                           + sum(int(a.size) * jnp.dtype(a.dtype).itemsize
                                 for a in weights)
                           + n * nc_p * 4),
    )

    def resident_spec(shape):
        idx = lambda i: (0,) * len(shape)   # same block every step (VMEM-resident)
        if single_buffer_weights:
            return pl.BlockSpec(shape, idx, pipeline_mode=pl.Buffered(1))
        return pl.BlockSpec(shape, idx)

    out_p = pl.pallas_call(
        classifier_kernel,
        out_shape=jax.ShapeDtypeStruct((n, nc_p), jnp.float32),
        grid=grid,
        in_specs=[
            pl.BlockSpec((tn, c), lambda i: (i, 0)),
            resident_spec((c, unit_p)),
            resident_spec((1, unit_p)),
            resident_spec((1, unit_p)),
            resident_spec((unit_p, unit_p)),
            resident_spec((1, unit_p)),
            resident_spec((1, unit_p)),
            resident_spec((unit_p, nc_p)),
            resident_spec((1, nc_p)),
        ],
        out_specs=pl.BlockSpec((tn, nc_p), lambda i: (i, 0)),
        compiler_params=pltpu.CompilerParams(
            dimension_semantics=("parallel",),
            vmem_limit_bytes=vmem_limit),
        cost_estimate=cost,
    )(x, *weights)

    return out_p[:, :num_classes]


def make_params(key, unit_size=100, num_classes=10):
    """Deterministic synthetic parameters matching the PyTorch module shapes.

    Linear weights are stored transposed (in_features, out_features) so the
    kernel does x @ W.  BatchNorm1d (eval) is folded into per-feature scale
    `s` and fused bias `fb = (b_lin - running_mean) * s + beta`.
    """
    k1, k2, k3, kb1, kb2, kb3 = jax.random.split(key, 6)

    def linear_init(kw, fan_in, fan_out, kb):
        bound = 1.0 / jnp.sqrt(fan_in)
        wgt = jax.random.uniform(kw, (fan_in, fan_out), jnp.float32, -bound, bound)
        b = jax.random.uniform(kb, (fan_out,), jnp.float32, -bound, bound)
        return wgt, b

    w1, b1 = linear_init(k1, IN_FEATURES, unit_size, kb1)
    w2, b2 = linear_init(k2, unit_size, unit_size, kb2)
    wc, bc = linear_init(k3, unit_size, num_classes, kb3)

    # BatchNorm1d init per module __init__: weight=1, bias=0; running stats
    # mean=0, var=1 (eval mode).
    gamma = jnp.ones((unit_size,), jnp.float32)
    beta = jnp.zeros((unit_size,), jnp.float32)
    rmean = jnp.zeros((unit_size,), jnp.float32)
    rvar = jnp.ones((unit_size,), jnp.float32)

    def fuse(b_lin):
        s = gamma / jnp.sqrt(rvar + BN_EPS)
        fb = (b_lin - rmean) * s + beta
        return fb.reshape(1, -1), s.reshape(1, -1)

    fb1, s1 = fuse(b1)
    fb2, s2 = fuse(b2)

    return (w1, fb1, s1, w2, fb2, s2, wc, bc.reshape(1, -1))


if __name__ == "__main__":
    key = jax.random.PRNGKey(0)
    k_x1, k_x2, k_p = jax.random.split(key, 3)

    unit_size, num_classes = 100, 10
    params = make_params(k_p, unit_size=unit_size, num_classes=num_classes)

    def reference(rois):
        # plain-JAX reference (eval-mode BN/dropout, identity revgrad)
        x_ref = jnp.mean(rois, axis=(2, 3))
        (w1, fb1, s1, w2, fb2, s2, wc, bc) = params
        h1 = jnp.maximum(x_ref @ w1 * s1 + fb1, 0.0)
        h2 = jnp.maximum(h1 @ w2 * s2 + fb2, 0.0)
        return h2 @ wc + bc

    # Test 1: tiny batch -> single full-dim block.
    N1, H1, W1 = 2, 4, 4
    rois1 = jax.random.normal(k_x1, (N1, IN_FEATURES, H1, W1), jnp.float32)
    logits1 = classifier_forward(rois1, params)
    jax.block_until_ready(logits1)
    assert logits1.shape == (N1, num_classes)
    assert jnp.allclose(logits1, reference(rois1), atol=1e-4, rtol=1e-4)

    # Test 2: tiled + ragged grid path (tn=8 over N=20 -> 3 grid steps,
    # last block partially out of bounds).
    N2, H2, W2 = 20, 2, 2
    rois2 = jax.random.normal(k_x2, (N2, IN_FEATURES, H2, W2), jnp.float32)
    logits2 = classifier_forward(rois2, params, tile_n=8)
    jax.block_until_ready(logits2)
    assert logits2.shape == (N2, num_classes)
    assert jnp.allclose(logits2, reference(rois2), atol=1e-4, rtol=1e-4)

    print("KERNEL_OK")
</pallas_src>

<mosaic_0001>
module attributes {stable_mosaic.version = 11 : i64} {
  func.func @_k(%arg0: i32, %arg1: memref<8x128xf32, #tpu.memory_space<vmem>>, %arg2: memref<8x128xf32, #tpu.memory_space<vmem>>) attributes {dimension_semantics = [#tpu.dimension_semantics<arbitrary>], iteration_bounds = array<i64: 2>, scalar_prefetch = 0 : i64, scratch_operands = 0 : i64, tpu.core_type = #tpu.core_type<tc>, window_params = [{pipeline_mode = #tpu.pipeline_mode<synchronous>, transform_indices = @transform_0, window_bounds = array<i64: 8, 128>}, {pipeline_mode = #tpu.pipeline_mode<synchronous>, transform_indices = @transform_1, window_bounds = array<i64: 8, 128>}]} {
    %c0 = arith.constant 0 : index
    %c0_0 = arith.constant 0 : index
    %0 = vector.load %arg1[%c0, %c0_0] : memref<8x128xf32, #tpu.memory_space<vmem>>, vector<8x128xf32>
    %cst = arith.constant 1.000000e+00 : f32
    %1 = vector.broadcast %cst : f32 to vector<8x128xf32>
    %2 = arith.addf %0, %1 : vector<8x128xf32>
    %c0_1 = arith.constant 0 : index
    %c0_2 = arith.constant 0 : index
    %3 = vector.load %arg2[%c0_1, %c0_2] : memref<8x128xf32, #tpu.memory_space<vmem>>, vector<8x128xf32>
    tpu.vector_store %arg2[%c0_1, %c0_2], %2 {strides = array<i32>} : memref<8x128xf32, #tpu.memory_space<vmem>>, vector<8x128xf32>,
    return
  }
  func.func @transform_0(%arg0: i32) -> (i32, i32) {
    %c0_i32 = arith.constant 0 : i32
    %c0_i32_0 = arith.constant 0 : i32
    %c0_i32_1 = arith.constant 0 : i32
    return %c0_i32, %c0_i32_0 : i32, i32
  }
  func.func @transform_1(%arg0: i32) -> (i32, i32) {
    %c0_i32 = arith.constant 0 : i32
    %c0_i32_0 = arith.constant 0 : i32
    %c0_i32_1 = arith.constant 0 : i32
    return %c0_i32, %c0_i32_0 : i32, i32
  }
}

module attributes {stable_mosaic.version = 11 : i64} {
  func.func @classifier_kernel(%arg0: i32, %arg1: memref<2x2048xf32, #tpu.memory_space<vmem>>, %arg2: memref<2048x128xf32, #tpu.memory_space<vmem>>, %arg3: memref<1x128xf32, #tpu.memory_space<vmem>>, %arg4: memref<1x128xf32, #tpu.memory_space<vmem>>, %arg5: memref<128x128xf32, #tpu.memory_space<vmem>>, %arg6: memref<1x128xf32, #tpu.memory_space<vmem>>, %arg7: memref<1x128xf32, #tpu.memory_space<vmem>>, %arg8: memref<128x128xf32, #tpu.memory_space<vmem>>, %arg9: memref<1x128xf32, #tpu.memory_space<vmem>>, %arg10: memref<2x128xf32, #tpu.memory_space<vmem>>) attributes {dimension_semantics = [#tpu.dimension_semantics<parallel>], iteration_bounds = array<i64: 1>, scalar_prefetch = 0 : i64, scratch_operands = 0 : i64, tpu.core_type = #tpu.core_type<tc>, window_params = [{transform_indices = @transform_0, window_bounds = array<i64: 2, 2048>}, {pipeline_mode = #tpu.pipeline_mode<synchronous>, transform_indices = @transform_1, window_bounds = array<i64: 2048, 128>}, {pipeline_mode = #tpu.pipeline_mode<synchronous>, transform_indices = @transform_2, window_bounds = array<i64: 1, 128>}, {pipeline_mode = #tpu.pipeline_mode<synchronous>, transform_indices = @transform_3, window_bounds = array<i64: 1, 128>}, {pipeline_mode = #tpu.pipeline_mode<synchronous>, transform_indices = @transform_4, window_bounds = array<i64: 128, 128>}, {pipeline_mode = #tpu.pipeline_mode<synchronous>, transform_indices = @transform_5, window_bounds = array<i64: 1, 128>}, {pipeline_mode = #tpu.pipeline_mode<synchronous>, transform_indices = @transform_6, window_bounds = array<i64: 1, 128>}, {pipeline_mode = #tpu.pipeline_mode<synchronous>, transform_indices = @transform_7, window_bounds = array<i64: 128, 128>}, {pipeline_mode = #tpu.pipeline_mode<synchronous>, transform_indices = @transform_8, window_bounds = array<i64: 1, 128>}, {transform_indices = @transform_9, window_bounds = array<i64: 2, 128>}]} {
    %c0 = arith.constant 0 : index
    %c0_0 = arith.constant 0 : index
    %0 = vector.load %arg1[%c0, %c0_0] : memref<2x2048xf32, #tpu.memory_space<vmem>>, vector<2x2048xf32>
    %c0_1 = arith.constant 0 : index
    %c0_2 = arith.constant 0 : index
    %1 = vector.load %arg2[%c0_1, %c0_2] : memref<2048x128xf32, #tpu.memory_space<vmem>>, vector<2048x128xf32>
    %cst = arith.constant dense<0.000000e+00> : vector<2x128xf32>
    %2 = tpu.matmul %0, %1, %cst {dimension_numbers = #tpu.dot_dimension_numbers<[1], [0], [0], [1], [0, 0, 1, 1], [], []>} : vector<2x2048xf32>, vector<2048x128xf32>, vector<2x128xf32> -> vector<2x128xf32>
    %c0_3 = arith.constant 0 : index
    %c0_4 = arith.constant 0 : index
    %3 = vector.load %arg4[%c0_3, %c0_4] : memref<1x128xf32, #tpu.memory_space<vmem>>, vector<1x128xf32>
    %4 = vector.broadcast %3 : vector<1x128xf32> to vector<2x128xf32>
    %5 = arith.mulf %2, %4 : vector<2x128xf32>
    %c0_5 = arith.constant 0 : index
    %c0_6 = arith.constant 0 : index
    %6 = vector.load %arg3[%c0_5, %c0_6] : memref<1x128xf32, #tpu.memory_space<vmem>>, vector<1x128xf32>
    %7 = vector.broadcast %6 : vector<1x128xf32> to vector<2x128xf32>
    %8 = arith.addf %5, %7 : vector<2x128xf32>
    %cst_7 = arith.constant 0.000000e+00 : f32
    %9 = vector.broadcast %cst_7 : f32 to vector<2x128xf32>
    %10 = arith.maximumf %8, %9 : vector<2x128xf32>
    %c0_8 = arith.constant 0 : index
    %c0_9 = arith.constant 0 : index
    %11 = vector.load %arg5[%c0_8, %c0_9] : memref<128x128xf32, #tpu.memory_space<vmem>>, vector<128x128xf32>
    %cst_10 = arith.constant dense<0.000000e+00> : vector<2x128xf32>
    %12 = tpu.matmul %10, %11, %cst_10 {dimension_numbers = #tpu.dot_dimension_numbers<[1], [0], [0], [1], [0, 0, 1, 1], [], []>} : vector<2x128xf32>, vector<128x128xf32>, vector<2x128xf32> -> vector<2x128xf32>
    %c0_11 = arith.constant 0 : index
    %c0_12 = arith.constant 0 : index
    %13 = vector.load %arg7[%c0_11, %c0_12] : memref<1x128xf32, #tpu.memory_space<vmem>>, vector<1x128xf32>
    %14 = vector.broadcast %13 : vector<1x128xf32> to vector<2x128xf32>
    %15 = arith.mulf %12, %14 : vector<2x128xf32>
    %c0_13 = arith.constant 0 : index
    %c0_14 = arith.constant 0 : index
    %16 = vector.load %arg6[%c0_13, %c0_14] : memref<1x128xf32, #tpu.memory_space<vmem>>, vector<1x128xf32>
    %17 = vector.broadcast %16 : vector<1x128xf32> to vector<2x128xf32>
    %18 = arith.addf %15, %17 : vector<2x128xf32>
    %cst_15 = arith.constant 0.000000e+00 : f32
    %19 = vector.broadcast %cst_15 : f32 to vector<2x128xf32>
    %20 = arith.maximumf %18, %19 : vector<2x128xf32>
    %c0_16 = arith.constant 0 : index
    %c0_17 = arith.constant 0 : index
    %21 = vector.load %arg8[%c0_16, %c0_17] : memref<128x128xf32, #tpu.memory_space<vmem>>, vector<128x128xf32>
    %cst_18 = arith.constant dense<0.000000e+00> : vector<2x128xf32>
    %22 = tpu.matmul %20, %21, %cst_18 {dimension_numbers = #tpu.dot_dimension_numbers<[1], [0], [0], [1], [0, 0, 1, 1], [], []>} : vector<2x128xf32>, vector<128x128xf32>, vector<2x128xf32> -> vector<2x128xf32>
    %c0_19 = arith.constant 0 : index
    %c0_20 = arith.constant 0 : index
    %23 = vector.load %arg9[%c0_19, %c0_20] : memref<1x128xf32, #tpu.memory_space<vmem>>, vector<1x128xf32>
    %24 = vector.broadcast %23 : vector<1x128xf32> to vector<2x128xf32>
    %25 = arith.addf %22, %24 : vector<2x128xf32>
    %c0_21 = arith.constant 0 : index
    %c0_22 = arith.constant 0 : index
    %26 = vector.load %arg10[%c0_21, %c0_22] : memref<2x128xf32, #tpu.memory_space<vmem>>, vector<2x128xf32>
    tpu.vector_store %arg10[%c0_21, %c0_22], %25 {strides = array<i32>} : memref<2x128xf32, #tpu.memory_space<vmem>>, vector<2x128xf32>,
    return
  }
  func.func @transform_0(%arg0: i32) -> (i32, i32) {
    %c0_i32 = arith.constant 0 : i32
    %c0_i32_0 = arith.constant 0 : i32
    return %arg0, %c0_i32 : i32, i32
  }
  func.func @transform_1(%arg0: i32) -> (i32, i32) {
    %c0_i32 = arith.constant 0 : i32
    %c0_i32_0 = arith.constant 0 : i32
    %c0_i32_1 = arith.constant 0 : i32
    return %c0_i32, %c0_i32_0 : i32, i32
  }
  func.func @transform_2(%arg0: i32) -> (i32, i32) {
    %c0_i32 = arith.constant 0 : i32
    %c0_i32_0 = arith.constant 0 : i32
    %c0_i32_1 = arith.constant 0 : i32
    return %c0_i32, %c0_i32_0 : i32, i32
  }
  func.func @transform_3(%arg0: i32) -> (i32, i32) {
    %c0_i32 = arith.constant 0 : i32
    %c0_i32_0 = arith.constant 0 : i32
    %c0_i32_1 = arith.constant 0 : i32
    return %c0_i32, %c0_i32_0 : i32, i32
  }
  func.func @transform_4(%arg0: i32) -> (i32, i32) {
    %c0_i32 = arith.constant 0 : i32
    %c0_i32_0 = arith.constant 0 : i32
    %c0_i32_1 = arith.constant 0 : i32
    return %c0_i32, %c0_i32_0 : i32, i32
  }
  func.func @transform_5(%arg0: i32) -> (i32, i32) {
    %c0_i32 = arith.constant 0 : i32
    %c0_i32_0 = arith.constant 0 : i32
    %c0_i32_1 = arith.constant 0 : i32
    return %c0_i32, %c0_i32_0 : i32, i32
  }
  func.func @transform_6(%arg0: i32) -> (i32, i32) {
    %c0_i32 = arith.constant 0 : i32
    %c0_i32_0 = arith.constant 0 : i32
    %c0_i32_1 = arith.constant 0 : i32
    return %c0_i32, %c0_i32_0 : i32, i32
  }
  func.func @transform_7(%arg0: i32) -> (i32, i32) {
    %c0_i32 = arith.constant 0 : i32
    %c0_i32_0 = arith.constant 0 : i32
    %c0_i32_1 = arith.constant 0 : i32
    return %c0_i32, %c0_i32_0 : i32, i32
  }
  func.func @transform_8(%arg0: i32) -> (i32, i32) {
    %c0_i32 = arith.constant 0 : i32
    %c0_i32_0 = arith.constant 0 : i32
    %c0_i32_1 = arith.constant 0 : i32
    return %c0_i32, %c0_i32_0 : i32, i32
  }
  func.func @transform_9(%arg0: i32) -> (i32, i32) {
    %c0_i32 = arith.constant 0 : i32
    %c0_i32_0 = arith.constant 0 : i32
    return %arg0, %c0_i32 : i32, i32
  }
}

</mosaic_0001>

<bundles_post_ra>
// kernel: tpu_custom_call.1
= control target key start
LH: loop header
LB: loop body
LE: loop exit
PB: predicated region body
PF: predicated region fallthrough
CT: control target
= control target key end

     0   :  { %6 = vsyncpa [#allocation3], 0  ;;  %s341_s0 = inlined_call_operand.hbm [shape: f32[8,128], index: 0, kind: input, shape index: {}]   ;;  %s342_s1 = inlined_call_operand.hbm [shape: f32[8,128], index: 1, kind: output, shape index: {}]  }
   0x1   :  { %7 = vsyncpa [#allocation4], 0  ;;  %s262_s6 = smov 0  }
   0x2 LB: > { %s145_s7 = sadd.s32 4294967295, %s248_s6   ;;  %p146_p0 = scmp.ge.s32.totalorder %s248_s6, 1  ;;  %s248_s6 = sphi %s262_s6, %s13_s6  }
   0x3   : > { %p60_p1 = scmp.lt.s32.totalorder %s248_s6, 3  ;;  %p276_p3 = scmp.eq.s32.totalorder %s145_s7, 0 }
   0x4   : > { %s250_s10 = smov [#allocation2]   ;;  %s180_s15 = scalar_lea.hbm %s341_s0, 128 }
   0x5   : > { %p270_p2 = pnand %p146_p0, %p60_p1  ;;  %s73_s11 = sshll.u32 %s250_s10, 4  ;;  %s74_s11 = int_to_ptr.vmem [resolvable:$true] %s73_s11 }
   0x6   : > { %s347_s9 = scalar_select %p276_p3, 1, 0 }
   0x7   : > { %s346_s8 = scalar_select %p270_p2, 1, 0 }
   0x8   : > { %p162_p4 = pneg %p270_p2  ;;  %p181_p6 = scmp.ne.s32.totalorder %s341_s0, %s180_s15 }
   0x9   : > { %p187_p10 = scmp.lt.u32.totalorder %s180_s15, %s341_s0 }
   0xa   : > { %p284_p5 = pnand %p276_p3, %p162_p4 }
   0xc   : > { %p182_p7 = pneg %p284_p5 }
   0xe   : > { %p183_p8 = pnand %p182_p7, %p181_p6 }
  0x10   : > { %p184_p9 = pneg %p183_p8 }
  0x12   : > { %p189_p11 = pnand %p187_p10, %p184_p9 }
  0x14   : > { %192 = shalt.err (!%p189_p11)
}
  0x15   : > { %s193_s20 = scalar_lea.vmem %s74_s11, 128  ;;  %p201_p1 = scmp.lt.s32.totalorder %s74_s11, %s74_s11 }
  0x16   : > { %p194_p12 = scmp.ne.s32.totalorder %s74_s11, %s193_s20  ;;  %p202_p4 = scmp.lt.s32.totalorder %s193_s20, %s193_s20 }
  0x18   : > { %p196_p13 = pnand %p194_p12, %p182_p7  ;;  %p203_p3 = por %p202_p4, %p201_p1 }
  0x1a   : > { %p197_p0 = pneg %p196_p13 }
  0x1c   : > { %p204_p2 = pnand %p203_p3, %p197_p0 }
  0x1e   : > { %207 = shalt.err (!%p204_p2)
}
  0x1f   : > { %165 = dma.hbm_to_vmem [thread:$0]  (!%p284_p5), %s341_s0, 128, %s74_s11, [#allocation3]  }
  0x20   : > { %p349_p6 = scmp.ne.s32.totalorder %s346_s8, 0 }
  0x21   : > { %p350_p8 = scmp.ne.s32.totalorder (!%p349_p6), %s347_s9, 0 }
  0x22   : > { %86 = sbr.rel (%p349_p6) target bundleno = 67 (0x43), region = 24 }
  0x29   : > { %239 = dma.done.wait (%p350_p8), [#allocation3], 128  }
  0x2a   : > { %241 = vsyncadd (%p350_p8), [#allocation3], 4294967168  ;;  %s251_s23 = smov [#allocation5]   ;;  %v96_v0 = vld [vmem:[#allocation2] sm:$0xff]  ;;  %p312_p2 = scmp.eq.s32.totalorder %s145_s7, 1 }
  0x2b   : > { %s106_s24 = sshll.u32 %s251_s23, 4  ;;  %v97_v1 = vadd.f32 1.0, %v96_v0  ;;  %s107_s24 = int_to_ptr.vmem [resolvable:$true] %s106_s24 }
  0x2c   : > { %s208_s26 = scalar_lea.vmem %s107_s24, 128  ;;  %p215_p9 = scmp.lt.s32.totalorder %s107_s24, %s107_s24 }
  0x2d   : > { %98 = vst [vmem:[#allocation5] sm:$0xff] %v97_v1  ;;  %p209_p3 = scmp.ne.s32.totalorder %s107_s24, %s208_s26  ;;  %p216_p10 = scmp.lt.s32.totalorder %s208_s26, %s208_s26 }
  0x2f   : > { %p210_p5 = pnand %p209_p3, %p312_p2  ;;  %p217_p11 = por %p216_p10, %p215_p9 }
  0x31   : > { %p211_p7 = pneg %p210_p5 }
  0x33   : > { %p218_p12 = pnand %p217_p11, %p211_p7 }
  0x35   : > { %221 = shalt.err (!%p218_p12)
}
  0x36   : > { %s222_s29 = scalar_lea.hbm %s342_s1, 128 }
  0x37   : > { %p223_p13 = scmp.ne.s32.totalorder %s342_s1, %s222_s29  ;;  %p228_p4 = scmp.lt.u32.totalorder %s222_s29, %s342_s1 }
  0x39   : > { %p224_p0 = pnand %p223_p13, %p312_p2 }
  0x3b   : > { %p225_p1 = pneg %p224_p0 }
  0x3d   : > { %p230_p6 = pnand %p228_p4, %p225_p1 }
  0x3f   : > { %233 = shalt.err (!%p230_p6)
}
  0x40   : > { %159 = dma.vmem_to_hbm [thread:$0]  (%p312_p2), %s107_s24, 128, %s342_s1, [#allocation4]  }
  0x41   : > { %243 = dma.done.wait (%p312_p2), [#allocation4], 128  }
  0x42   : > { %245 = vsyncadd (%p312_p2), [#allocation4], 4294967168 }
  0x43 PF: > { %s13_s6 = sadd.s32 1, %s248_s6  }
  0x44   : > { %p10_p8 = scmp.ge.s32.totalorder %s13_s6, 4  }
  0x46   :  { %12 = sbr.rel (!%p10_p8) target bundleno = 2 (0x2), region = 53 }
  0x4d   :  { %119 = vsyncpa [#allocation3], 1 }
  0x4e   :  { %121 = vsyncpa [#allocation3 + $0x1], 1 }
  0x4f   :  { %122 = vsyncpa [#allocation4], 1 }
  0x50   :  { %124 = vsyncpa [#allocation4 + $0x1], 1 }

// kernel: tpu_custom_call.1
= control target key start
LH: loop header
LB: loop body
LE: loop exit
PB: predicated region body
PF: predicated region fallthrough
CT: control target
= control target key end

     0   :  { %14 = vsyncpa [#allocation3], 0  ;;  %s2252_s0 = inlined_call_operand.hbm [shape: f32[2,2048], index: 0, kind: input, shape index: {}]   ;;  %s2253_s1 = inlined_call_operand.hbm [shape: f32[2048,128], index: 1, kind: input, shape index: {}]   ;;  %s2254_s2 = inlined_call_operand.vmem [shape: f32[1,128], index: 2, kind: input, shape index: {}]   ;;  %s2255_s3 = inlined_call_operand.vmem [shape: f32[1,128], index: 3, kind: input, shape index: {}]   ;;  %s2256_s4 = inlined_call_operand.hbm [shape: f32[128,128], index: 4, kind: input, shape index: {}]   ;;  %s2257_s5 = inlined_call_operand.vmem [shape: f32[1,128], index: 5, kind: input, shape index: {}]   ;;  %s2258_s6 = inlined_call_operand.vmem [shape: f32[1,128], index: 6, kind: input, shape index: {}]   ;;  %s2259_s7 = inlined_call_operand.hbm [shape: f32[128,128], index: 7, kind: input, shape index: {}]   ;;  %s2260_s8 = inlined_call_operand.vmem [shape: f32[1,128], index: 8, kind: input, shape index: {}]   ;;  %s2261_s9 = inlined_call_operand.hbm [shape: f32[2,128], index: 9, kind: output, shape index: {}]  }
   0x1   :  { %15 = vsyncpa [#allocation6], 0 }
   0x2   :  { %16 = vsyncpa [#allocation9], 0 }
   0x3   :  { %17 = vsyncpa [#allocation4], 0  ;;  %s2051_s30 = smov [#allocation5]   ;;  %s1933_s13 = scalar_lea.hbm %s2253_s1, 32768 }
   0x4   :  { %s33_s10 = sshll.u32 %s2051_s30, 4  ;;  %p1934_p0 = scmp.ne.s32.totalorder %s2253_s1, %s1933_s13  ;;  %s34_s10 = int_to_ptr.vmem [resolvable:$true] %s33_s10 }
   0x5   :  { %p1937_p1 = scmp.lt.u32.totalorder %s1933_s13, %s2253_s1 }
   0x7   :  { %p1939_p2 = pnand %p1937_p1, %p1934_p0 }
   0x9   :  { %1942 = shalt.err (!%p1939_p2)
}
   0xa   :  { %s1943_s18 = scalar_lea.vmem %s34_s10, 32768  ;;  %p1948_p4 = scmp.lt.s32.totalorder %s34_s10, %s34_s10 }
   0xb   :  { %p1944_p3 = scmp.ne.s32.totalorder %s34_s10, %s1943_s18  ;;  %p1949_p5 = scmp.lt.s32.totalorder %s1943_s18, %s1943_s18 }
   0xd   :  { %p1950_p6 = por %p1949_p5, %p1948_p4 }
   0xf   :  { %p1951_p7 = pnand %p1950_p6, %p1944_p3 }
  0x11   :  { %1954 = shalt.err (!%p1951_p7)
}
  0x12   :  { %s2052_s19 = smov 128   ;;  %s2053_s20 = smov 8  }
  0x13   :  { %39 = dma.hbm_to_vmem [thread:$0]  %s2253_s1, 32768, %s34_s10, [#allocation6], %s2052_s19, %s2052_s19, %s2053_s20  }
  0x14   :  { %s2054_s23 = smov [#allocation2]   ;;  %s2055_s25 = smov [#allocation7]  }
  0x15   :  { %s24_s24 = sshll.u32 %s2054_s23, 4  ;;  %s49_s26 = sshll.u32 %s2055_s25, 4  ;;  %s25_s24 = int_to_ptr.vmem [resolvable:$true] %s24_s24  ;;  %s50_s26 = int_to_ptr.vmem [resolvable:$true] %s49_s26 }
  0x16   :  { %s1955_s29 = scalar_lea.hbm %s2252_s0, 512 }
  0x17   :  { %p1956_p8 = scmp.ne.s32.totalorder %s2252_s0, %s1955_s29  ;;  %p1959_p9 = scmp.lt.u32.totalorder %s1955_s29, %s2252_s0 }
  0x19   :  { %p1961_p10 = pnand %p1959_p9, %p1956_p8 }
  0x1b   :  { %1964 = shalt.err (!%p1961_p10)
}
  0x1c   :  { %s1965_s1 = scalar_lea.vmem %s25_s24, 512  ;;  %p1970_p12 = scmp.lt.s32.totalorder %s25_s24, %s25_s24 }
  0x1d   :  { %p1966_p11 = scmp.ne.s32.totalorder %s25_s24, %s1965_s1  ;;  %p1971_p13 = scmp.lt.s32.totalorder %s1965_s1, %s1965_s1 }
  0x1f   :  { %p1972_p0 = por %p1971_p13, %p1970_p12 }
  0x21   :  { %p1973_p1 = pnand %p1972_p0, %p1966_p11 }
  0x23   :  { %1976 = shalt.err (!%p1973_p1)
}
  0x24   :  { %27 = dma.hbm_to_vmem [thread:$0]  %s2252_s0, 512, %s25_s24, [#allocation3]  }
  0x25   :  { %s1977_s17 = scalar_lea.hbm %s2256_s4, 2048 }
  0x26   :  { %p1978_p2 = scmp.ne.s32.totalorder %s2256_s4, %s1977_s17  ;;  %p1981_p3 = scmp.lt.u32.totalorder %s1977_s17, %s2256_s4 }
  0x28   :  { %p1983_p4 = pnand %p1981_p3, %p1978_p2 }
  0x2a   :  { %1986 = shalt.err (!%p1983_p4)
}
  0x2b   :  { %s1987_s25 = scalar_lea.vmem %s50_s26, 2048  ;;  %p1992_p6 = scmp.lt.s32.totalorder %s50_s26, %s50_s26 }
  0x2c   :  { %p1988_p5 = scmp.ne.s32.totalorder %s50_s26, %s1987_s25  ;;  %p1993_p7 = scmp.lt.s32.totalorder %s1987_s25, %s1987_s25 }
  0x2e   :  { %p1994_p8 = por %p1993_p7, %p1992_p6 }
  0x30   :  { %p1995_p9 = pnand %p1994_p8, %p1988_p5 }
  0x32   :  { %1998 = shalt.err (!%p1995_p9)
}
  0x33   :  { %55 = dma.hbm_to_vmem [thread:$0]  %s2256_s4, 2048, %s50_s26, [#allocation6], %s2052_s19, %s2052_s19, %s2053_s20  }
  0x34   :  { %s2056_s27 = smov [#allocation8]   ;;  %s1999_s11 = scalar_lea.hbm %s2259_s7, 2048 }
  0x35   :  { %s65_s28 = sshll.u32 %s2056_s27, 4  ;;  %p2000_p10 = scmp.ne.s32.totalorder %s2259_s7, %s1999_s11  ;;  %s66_s28 = int_to_ptr.vmem [resolvable:$true] %s65_s28 }
  0x36   :  { %p2003_p11 = scmp.lt.u32.totalorder %s1999_s11, %s2259_s7 }
  0x38   :  { %p2005_p12 = pnand %p2003_p11, %p2000_p10 }
  0x3a   :  { %2008 = shalt.err (!%p2005_p12)
}
  0x3b   :  { %s2009_s14 = scalar_lea.vmem %s66_s28, 2048  ;;  %p2014_p0 = scmp.lt.s32.totalorder %s66_s28, %s66_s28 }
  0x3c   :  { %p2010_p13 = scmp.ne.s32.totalorder %s66_s28, %s2009_s14  ;;  %p2015_p1 = scmp.lt.s32.totalorder %s2009_s14, %s2009_s14 }
  0x3e   :  { %p2016_p2 = por %p2015_p1, %p2014_p0 }
  0x40   :  { %p2017_p3 = pnand %p2016_p2, %p2010_p13 }
  0x42   :  { %2020 = shalt.err (!%p2017_p3)
}
  0x43   :  { %71 = dma.hbm_to_vmem [thread:$0]  %s2259_s7, 2048, %s66_s28, [#allocation9], %s2052_s19, %s2052_s19, %s2053_s20  }
  0x44   :  { %2043 = dma.done.wait [#allocation3], 512  }
  0x45   :  { %2044 = vsyncadd [#allocation3], 4294966784 }
  0x46   :  { %2045 = dma.done.wait [#allocation6], 34816  }
  0x47   :  { %2046 = vsyncadd [#allocation6], 4294932480 }
  0x48   :  { %2047 = dma.done.wait [#allocation9], 2048  }
  0x49   :  { %2048 = vsyncadd [#allocation9], 4294965248  ;;  %v106_v0 = vld [vmem:[#allocation5 + $0x80] sm:$0xff]  ;;  %v107_v1 = vld [vmem:[#allocation5 + $0x88] sm:$0xff]  ;;  %v2057_v47 = vmov 1983009808   ;;  %v354_v49 = vlaneseq }
  0x4a   :  { %v138_v2 = vld [vmem:[#allocation5 + $0x180] sm:$0xff]  ;;  %v1614_v3 = vpack.c.bf16 %v107_v1, %v106_v0  ;;  %v139_v4 = vld [vmem:[#allocation5 + $0x188] sm:$0xff]  ;;  %v108_v11 = vld [vmem:[#allocation5 + $0x90] sm:$0xff]  ;;  %v352_v48 = vunpack.c.l.s4 %v2057_v47  ;;  %vm2059_vm0 = vmmov 0   ;;  %s2061_s22 = smov [#allocation10]  }
  0x4b   :  { %v90_v5 = vld [vmem:[#allocation5] sm:$0xff]  ;;  %v91_v6 = vld [vmem:[#allocation5 + $0x8] sm:$0xff]  ;;  %v1646_v7 = vpack.c.bf16 %v139_v4, %v138_v2  ;;  %v109_v13 = vld [vmem:[#allocation5 + $0x98] sm:$0xff]  ;;  %v355_v0 = vshrl.u32 %v354_v49, 7  ;;  %s1214_s23 = sshll.u32 %s2061_s22, 4  ;;  %s1215_s23 = int_to_ptr.vmem [resolvable:$true] %s1214_s23 }
  0x4c   :  { %v1616_v8 = vpack.c.bf16 %v91_v6, %v90_v5  ;;  %v122_v9 = vld [vmem:[#allocation5 + $0x100] sm:$0xff]  ;;  %v123_v10 = vld [vmem:[#allocation5 + $0x108] sm:$0xff]  ;;  %1615 = vmatprep.subr.bf16.mxu0 %v1614_v3  ;;  %v140_v14 = vld [vmem:[#allocation5 + $0x190] sm:$0xff]  ;;  %v1618_v16 = vpack.c.bf16 %v109_v13, %v108_v11  ;;  %v353_v63 = vunpack.c.0.s8 %v352_v48  ;;  %p2026_p5 = scmp.lt.s32.totalorder %s1215_s23, %s1215_s23 }
  0x4d   :  { %v1648_v12 = vpack.c.bf16 %v123_v10, %v122_v9  ;;  %v141_v15 = vld [vmem:[#allocation5 + $0x198] sm:$0xff]  ;;  %1647 = vmatprep.subr.bf16.mxu1 %v1646_v7  ;;  %v92_v18 = vld [vmem:[#allocation5 + $0x10] sm:$0xff]  ;;  %v110_v23 = vld [vmem:[#allocation5 + $0xa0] sm:$0xff] }
  0x4e   :  { %1617 = vmatpush3.bf16.msra.mxu0 %v1616_v8  ;;  %v1650_v17 = vpack.c.bf16 %v141_v15, %v140_v14  ;;  %v93_v19 = vld [vmem:[#allocation5 + $0x18] sm:$0xff]  ;;  %v124_v20 = vld [vmem:[#allocation5 + $0x110] sm:$0xff]  ;;  %v111_v24 = vld [vmem:[#allocation5 + $0xa8] sm:$0xff]  ;;  %v2169_v13 = vsub.s32 %v353_v63, %v355_v0 }
  0x4f   :  { %1649 = vmatpush3.bf16.msra.mxu1 %v1648_v12  ;;  %v1620_v21 = vpack.c.bf16 %v93_v19, %v92_v18  ;;  %v125_v22 = vld [vmem:[#allocation5 + $0x118] sm:$0xff]  ;;  %1619 = vmatprep.subr.bf16.mxu0 %v1618_v16  ;;  %v1622_v26 = vpack.c.bf16 %v111_v24, %v110_v23  ;;  %v142_v27 = vld [vmem:[#allocation5 + $0x1a0] sm:$0xff]  ;;  %v143_v28 = vld [vmem:[#allocation5 + $0x1a8] sm:$0xff] }
  0x50   :  { %1651 = vmatprep.subr.bf16.mxu1 %v1650_v17  ;;  %v1652_v25 = vpack.c.bf16 %v125_v22, %v124_v20  ;;  %v94_v29 = vld [vmem:[#allocation5 + $0x20] sm:$0xff]  ;;  %v1654_v30 = vpack.c.bf16 %v143_v28, %v142_v27  ;;  %v95_v31 = vld [vmem:[#allocation5 + $0x28] sm:$0xff]  ;;  %v112_v35 = vld [vmem:[#allocation5 + $0xb0] sm:$0xff] }
  0x51   :  { %v126_v32 = vld [vmem:[#allocation5 + $0x120] sm:$0xff]  ;;  %v127_v33 = vld [vmem:[#allocation5 + $0x128] sm:$0xff]  ;;  %v1624_v34 = vpack.c.bf16 %v95_v31, %v94_v29  ;;  %v113_v36 = vld [vmem:[#allocation5 + $0xb8] sm:$0xff] }
  0x52   :  { %1621 = vmatpush3.bf16.msra.mxu0 %v1620_v21  ;;  %v144_v37 = vld [vmem:[#allocation5 + $0x1b0] sm:$0xff]  ;;  %v1656_v38 = vpack.c.bf16 %v127_v33, %v126_v32  ;;  %v1626_v39 = vpack.c.bf16 %v113_v36, %v112_v35  ;;  %v145_v40 = vld [vmem:[#allocation5 + $0x1b8] sm:$0xff]  ;;  %v114_v46 = vld [vmem:[#allocation5 + $0xc0] sm:$0xff] }
  0x53   :  { %1653 = vmatpush3.bf16.msra.mxu1 %v1652_v25  ;;  %1623 = vmatprep.subr.bf16.mxu0 %v1622_v26  ;;  %v96_v41 = vld [vmem:[#allocation5 + $0x30] sm:$0xff]  ;;  %v97_v42 = vld [vmem:[#allocation5 + $0x38] sm:$0xff]  ;;  %v1658_v43 = vpack.c.bf16 %v145_v40, %v144_v37  ;;  %v115_v50 = vld [vmem:[#allocation5 + $0xc8] sm:$0xff] }
  0x54   :  { %1655 = vmatprep.subr.bf16.mxu1 %v1654_v30  ;;  %v128_v44 = vld [vmem:[#allocation5 + $0x130] sm:$0xff]  ;;  %v129_v45 = vld [vmem:[#allocation5 + $0x138] sm:$0xff]  ;;  %v146_v51 = vld [vmem:[#allocation5 + $0x1c0] sm:$0xff]  ;;  %v1628_v53 = vpack.c.bf16 %v97_v42, %v96_v41  ;;  %v1630_v55 = vpack.c.bf16 %v115_v50, %v114_v46 }
  0x55   :  { %v147_v52 = vld [vmem:[#allocation5 + $0x1c8] sm:$0xff]  ;;  %v1660_v54 = vpack.c.bf16 %v129_v45, %v128_v44  ;;  %v98_v56 = vld [vmem:[#allocation5 + $0x40] sm:$0xff]  ;;  %v116_v61 = vld [vmem:[#allocation5 + $0xd0] sm:$0xff] }
  0x56   :  { %1625 = vmatpush3.bf16.msra.mxu0 %v1624_v34  ;;  %v99_v57 = vld [vmem:[#allocation5 + $0x48] sm:$0xff]  ;;  %v130_v58 = vld [vmem:[#allocation5 + $0x140] sm:$0xff]  ;;  %v1662_v59 = vpack.c.bf16 %v147_v52, %v146_v51  ;;  %v117_v62 = vld [vmem:[#allocation5 + $0xd8] sm:$0xff] }
  0x57   :  { %1657 = vmatpush3.bf16.msra.mxu1 %v1656_v38  ;;  %1627 = vmatprep.subr.bf16.mxu0 %v1626_v39  ;;  %v131_v60 = vld [vmem:[#allocation5 + $0x148] sm:$0xff]  ;;  %v148_v1 = vld [vmem:[#allocation5 + $0x1d0] sm:$0xff]  ;;  %v149_v2 = vld [vmem:[#allocation5 + $0x1d8] sm:$0xff]  ;;  %v1632_v3 = vpack.c.bf16 %v99_v57, %v98_v56  ;;  %v1634_v5 = vpack.c.bf16 %v117_v62, %v116_v61 }
  0x58   :  { %1659 = vmatprep.subr.bf16.mxu1 %v1658_v43  ;;  %v1664_v4 = vpack.c.bf16 %v131_v60, %v130_v58  ;;  %v100_v6 = vld [vmem:[#allocation5 + $0x50] sm:$0xff]  ;;  %v101_v7 = vld [vmem:[#allocation5 + $0x58] sm:$0xff]  ;;  %v1666_v9 = vpack.c.bf16 %v149_v2, %v148_v1  ;;  %v118_v11 = vld [vmem:[#allocation5 + $0xe0] sm:$0xff] }
  0x59   :  { %v132_v8 = vld [vmem:[#allocation5 + $0x150] sm:$0xff]  ;;  %v133_v10 = vld [vmem:[#allocation5 + $0x158] sm:$0xff]  ;;  %v119_v12 = vld [vmem:[#allocation5 + $0xe8] sm:$0xff]  ;;  %v1636_v16 = vpack.c.bf16 %v101_v7, %v100_v6 }
  0x5a   :  { %1629 = vmatpush3.bf16.msra.mxu0 %v1628_v53  ;;  %v150_v14 = vld [vmem:[#allocation5 + $0x1e0] sm:$0xff]  ;;  %v151_v15 = vld [vmem:[#allocation5 + $0x1e8] sm:$0xff]  ;;  %v1668_v18 = vpack.c.bf16 %v133_v10, %v132_v8  ;;  %v1638_v19 = vpack.c.bf16 %v119_v12, %v118_v11  ;;  %v120_v25 = vld [vmem:[#allocation5 + $0xf0] sm:$0xff] }
  0x5b   :  { %1661 = vmatpush3.bf16.msra.mxu1 %v1660_v54  ;;  %1631 = vmatprep.subr.bf16.mxu0 %v1630_v55  ;;  %v102_v17 = vld [vmem:[#allocation5 + $0x60] sm:$0xff]  ;;  %v103_v20 = vld [vmem:[#allocation5 + $0x68] sm:$0xff]  ;;  %v1670_v23 = vpack.c.bf16 %v151_v15, %v150_v14  ;;  %v121_v26 = vld [vmem:[#allocation5 + $0xf8] sm:$0xff] }
  0x5c   :  { %1663 = vmatprep.subr.bf16.mxu1 %v1662_v59  ;;  %v134_v21 = vld [vmem:[#allocation5 + $0x160] sm:$0xff]  ;;  %v135_v24 = vld [vmem:[#allocation5 + $0x168] sm:$0xff]  ;;  %v152_v29 = vld [vmem:[#allocation5 + $0x1f0] sm:$0xff]  ;;  %v1640_v31 = vpack.c.bf16 %v103_v20, %v102_v17  ;;  %v1642_v35 = vpack.c.bf16 %v121_v26, %v120_v25 }
  0x5d   :  { %v86_v22 = vld [vmem:[#allocation2] sm:$0xff]  ;;  %v153_v30 = vld [vmem:[#allocation5 + $0x1f8] sm:$0xff]  ;;  %v1672_v34 = vpack.c.bf16 %v135_v24, %v134_v21  ;;  %v104_v36 = vld [vmem:[#allocation5 + $0x70] sm:$0xff] }
  0x5e   :  { %1633 = vmatpush3.bf16.msra.mxu0 %v1632_v3  ;;  %v357_v27 = vrot.slane %v86_v22, %v2169_v13  ;;  %v350_v28 = vcombine.high %v86_v22, %v86_v22  ;;  %v105_v37 = vld [vmem:[#allocation5 + $0x78] sm:$0xff]  ;;  %v136_v38 = vld [vmem:[#allocation5 + $0x170] sm:$0xff]  ;;  %v1674_v39 = vpack.c.bf16 %v153_v30, %v152_v29  ;;  %v170_v42 = vld [vmem:[#allocation5 + $0x280] sm:$0xff] }
  0x5f   :  { %1665 = vmatpush3.bf16.msra.mxu1 %v1664_v4  ;;  %1635 = vmatprep.subr.bf16.mxu0 %v1634_v5  ;;  %v137_v40 = vld [vmem:[#allocation5 + $0x178] sm:$0xff]  ;;  %v171_v43 = vld [vmem:[#allocation5 + $0x288] sm:$0xff]  ;;  %v202_v44 = vld [vmem:[#allocation5 + $0x380] sm:$0xff]  ;;  %v1644_v46 = vpack.c.bf16 %v105_v37, %v104_v36 }
  0x60   :  { %1667 = vmatprep.subr.bf16.mxu1 %v1666_v9  ;;  %v365_v32 = vcombine.high %v357_v27, %v357_v27  ;;  %v364_v33 = vrot.slane %v350_v28, %v2169_v13  ;;  %v203_v45 = vld [vmem:[#allocation5 + $0x388] sm:$0xff]  ;;  %v1676_v47 = vpack.c.bf16 %v137_v40, %v136_v38  ;;  %v1678_v48 = vpack.c.bf16 %v171_v43, %v170_v42  ;;  %v154_v49 = vld [vmem:[#allocation5 + $0x200] sm:$0xff]  ;;  %v172_v54 = vld [vmem:[#allocation5 + $0x290] sm:$0xff] }
  0x61   :  { %v155_v50 = vld [vmem:[#allocation5 + $0x208] sm:$0xff]  ;;  %v186_v51 = vld [vmem:[#allocation5 + $0x300] sm:$0xff]  ;;  %v1710_v52 = vpack.c.bf16 %v203_v45, %v202_v44  ;;  %v173_v55 = vld [vmem:[#allocation5 + $0x298] sm:$0xff] }
  0x62   :  { %1637 = vmatpush3.bf16.msra.mxu0 %v1636_v16  ;;  %498 = vmatprep.mubr.f32.mxu0 %v365_v32  ;;  %v366_v41 = vcombine.high %v364_v33, %v364_v33  ;;  %v187_v53 = vld [vmem:[#allocation5 + $0x308] sm:$0xff]  ;;  %v204_v56 = vld [vmem:[#allocation5 + $0x390] sm:$0xff]  ;;  %v205_v57 = vld [vmem:[#allocation5 + $0x398] sm:$0xff]  ;;  %v1680_v58 = vpack.c.bf16 %v155_v50, %v154_v49  ;;  %v1682_v60 = vpack.c.bf16 %v173_v55, %v172_v54 }
  0x63   :  { %1669 = vmatpush3.bf16.msra.mxu1 %v1668_v18  ;;  %1639 = vmatprep.subr.bf16.mxu0 %v1638_v19  ;;  %v1712_v59 = vpack.c.bf16 %v187_v53, %v186_v51  ;;  %v156_v61 = vld [vmem:[#allocation5 + $0x210] sm:$0xff]  ;;  %v157_v62 = vld [vmem:[#allocation5 + $0x218] sm:$0xff]  ;;  %v1714_v0 = vpack.c.bf16 %v205_v57, %v204_v56  ;;  %v174_v2 = vld [vmem:[#allocation5 + $0x2a0] sm:$0xff] }
  0x64   :  { %1671 = vmatprep.subr.bf16.mxu1 %v1670_v23  ;;  %568 = vmatprep.mubr.f32.mxu1 %v366_v41  ;;  %v188_v63 = vld [vmem:[#allocation5 + $0x310] sm:$0xff]  ;;  %v189_v1 = vld [vmem:[#allocation5 + $0x318] sm:$0xff]  ;;  %v175_v3 = vld [vmem:[#allocation5 + $0x2a8] sm:$0xff]  ;;  %v1684_v6 = vpack.c.bf16 %v157_v62, %v156_v61 }
  0x65   :  { %v206_v4 = vld [vmem:[#allocation5 + $0x3a0] sm:$0xff]  ;;  %v207_v5 = vld [vmem:[#allocation5 + $0x3a8] sm:$0xff]  ;;  %v1716_v7 = vpack.c.bf16 %v189_v1, %v188_v63  ;;  %v1686_v8 = vpack.c.bf16 %v175_v3, %v174_v2  ;;  %v176_v15 = vld [vmem:[#allocation5 + $0x2b0] sm:$0xff] }
  0x66   :  { %1641 = vmatpush3.bf16.msra.mxu0 %v1640_v31  ;;  %v158_v9 = vld [vmem:[#allocation5 + $0x220] sm:$0xff]  ;;  %v159_v10 = vld [vmem:[#allocation5 + $0x228] sm:$0xff]  ;;  %v1718_v12 = vpack.c.bf16 %v207_v5, %v206_v4  ;;  %v177_v16 = vld [vmem:[#allocation5 + $0x2b8] sm:$0xff] }
  0x67   :  { %1673 = vmatpush3.bf16.msra.mxu1 %v1672_v34  ;;  %1643 = vmatprep.subr.bf16.mxu0 %v1642_v35  ;;  %v190_v11 = vld [vmem:[#allocation5 + $0x320] sm:$0xff]  ;;  %v191_v14 = vld [vmem:[#allocation5 + $0x328] sm:$0xff]  ;;  %v208_v17 = vld [vmem:[#allocation5 + $0x3b0] sm:$0xff]  ;;  %v1688_v19 = vpack.c.bf16 %v159_v10, %v158_v9  ;;  %v1690_v21 = vpack.c.bf16 %v177_v16, %v176_v15 }
  0x68   :  { %1675 = vmatprep.subr.bf16.mxu1 %v1674_v39  ;;  %v209_v18 = vld [vmem:[#allocation5 + $0x3b8] sm:$0xff]  ;;  %v1720_v20 = vpack.c.bf16 %v191_v14, %v190_v11  ;;  %v160_v22 = vld [vmem:[#allocation5 + $0x230] sm:$0xff]  ;;  %v179_v28 = vld [vmem:[#allocation5 + $0x2c8] sm:$0xff] }
  0x69   :  { %v161_v23 = vld [vmem:[#allocation5 + $0x238] sm:$0xff]  ;;  %v192_v24 = vld [vmem:[#allocation5 + $0x330] sm:$0xff]  ;;  %v1722_v25 = vpack.c.bf16 %v209_v18, %v208_v17  ;;  %v210_v29 = vld [vmem:[#allocation5 + $0x3c0] sm:$0xff] }
  0x6a   :  { %1645 = vmatpush3.bf16.msra.mxu0 %v1644_v46  ;;  %v193_v26 = vld [vmem:[#allocation5 + $0x338] sm:$0xff]  ;;  %v211_v30 = vld [vmem:[#allocation5 + $0x3c8] sm:$0xff]  ;;  %v1692_v32 = vpack.c.bf16 %v161_v23, %v160_v22  ;;  %v162_v37 = vld [vmem:[#allocation5 + $0x240] sm:$0xff] }
  0x6b   :  { %1677 = vmatpush3.bf16.msra.mxu1 %v1676_v47  ;;  %1679 = vmatprep.subr.bf16.mxu0 %v1678_v48  ;;  %v87_v31 = vld [vmem:[#allocation2 + $0x8] sm:$0xff]  ;;  %v1724_v35 = vpack.c.bf16 %v193_v26, %v192_v24  ;;  %v194_v39 = vld [vmem:[#allocation5 + $0x340] sm:$0xff]  ;;  %v1726_v40 = vpack.c.bf16 %v211_v30, %v210_v29  ;;  %v180_v42 = vld [vmem:[#allocation5 + $0x2d0] sm:$0xff] }
  0x6c   :  { %1711 = vmatprep.subr.bf16.mxu1 %v1710_v52  ;;  %v367_v34 = vcombine.high %v87_v31, %v87_v31  ;;  %v163_v38 = vld [vmem:[#allocation5 + $0x248] sm:$0xff]  ;;  %v181_v43 = vld [vmem:[#allocation5 + $0x2d8] sm:$0xff]  ;;  %v212_v46 = vld [vmem:[#allocation5 + $0x3d0] sm:$0xff] }
  0x6d   :  { %499 = vmatmul.mubr.f32.vlgmr.msra.gmra.mrb[0].mxu0 %v357_v27  ;;  %v178_v27 = vld [vmem:[#allocation5 + $0x2c0] sm:$0xff]  ;;  %v195_v41 = vld [vmem:[#allocation5 + $0x348] sm:$0xff]  ;;  %v213_v47 = vld [vmem:[#allocation5 + $0x3d8] sm:$0xff]  ;;  %v1696_v48 = vpack.c.bf16 %v163_v38, %v162_v37  ;;  %v1698_v51 = vpack.c.bf16 %v181_v43, %v180_v42 }
  0x6e   :  { %569 = vmatmul.mubr.f32.vlgmr.msra.gmra.mrb[0].mxu1 %v364_v33  ;;  %1681 = vmatpush3.bf16.msra.mxu0 %v1680_v58  ;;  %v2174_v33 = vrot.slane %v87_v31, %v2169_v13  ;;  %v1694_v36 = vpack.c.bf16 %v179_v28, %v178_v27  ;;  %v2179_v45 = vrot.slane %v367_v34, %v2169_v13  ;;  %v164_v52 = vld [vmem:[#allocation5 + $0x250] sm:$0xff]  ;;  %v165_v53 = vld [vmem:[#allocation5 + $0x258] sm:$0xff]  ;;  %v182_v57 = vld [vmem:[#allocation5 + $0x2e0] sm:$0xff] }
  0x6f   :  { %1713 = vmatpush3.bf16.msra.mxu1 %v1712_v59  ;;  %1683 = vmatprep.subr.bf16.mxu0 %v1682_v60  ;;  %v1728_v50 = vpack.c.bf16 %v195_v41, %v194_v39  ;;  %v196_v54 = vld [vmem:[#allocation5 + $0x350] sm:$0xff]  ;;  %v1730_v55 = vpack.c.bf16 %v213_v47, %v212_v46  ;;  %v197_v56 = vld [vmem:[#allocation5 + $0x358] sm:$0xff]  ;;  %v183_v58 = vld [vmem:[#allocation5 + $0x2e8] sm:$0xff]  ;;  %v1700_v61 = vpack.c.bf16 %v165_v53, %v164_v52 }
  0x70   :  { %1715 = vmatprep.subr.bf16.mxu1 %v1714_v0  ;;  %v382_v44 = vcombine.high %v2174_v33, %v2174_v33  ;;  %v383_v49 = vcombine.high %v2179_v45, %v2179_v45  ;;  %v214_v59 = vld [vmem:[#allocation5 + $0x3e0] sm:$0xff]  ;;  %v215_v60 = vld [vmem:[#allocation5 + $0x3e8] sm:$0xff]  ;;  %v1732_v62 = vpack.c.bf16 %v197_v56, %v196_v54  ;;  %v1702_v63 = vpack.c.bf16 %v183_v58, %v182_v57  ;;  %v184_v5 = vld [vmem:[#allocation5 + $0x2f0] sm:$0xff] }
  0x71   :  { %v166_v0 = vld [vmem:[#allocation5 + $0x260] sm:$0xff]  ;;  %v167_v1 = vld [vmem:[#allocation5 + $0x268] sm:$0xff]  ;;  %v1734_v3 = vpack.c.bf16 %v215_v60, %v214_v59  ;;  %v169_v14 = vld [vmem:[#allocation5 + $0x278] sm:$0xff] }
  0x72   :  { %1685 = vmatpush3.bf16.msra.mxu0 %v1684_v6  ;;  %638 = vmatprep.mubr.f32.mxu0 %v382_v44  ;;  %v198_v2 = vld [vmem:[#allocation5 + $0x360] sm:$0xff]  ;;  %v199_v4 = vld [vmem:[#allocation5 + $0x368] sm:$0xff]  ;;  %v185_v6 = vld [vmem:[#allocation5 + $0x2f8] sm:$0xff]  ;;  %v1704_v9 = vpack.c.bf16 %v167_v1, %v166_v0 }
  0x73   :  { %1717 = vmatpush3.bf16.msra.mxu1 %v1716_v7  ;;  %1687 = vmatprep.subr.bf16.mxu0 %v1686_v8  ;;  %v216_v7 = vld [vmem:[#allocation5 + $0x3f0] sm:$0xff]  ;;  %v217_v8 = vld [vmem:[#allocation5 + $0x3f8] sm:$0xff]  ;;  %v1736_v10 = vpack.c.bf16 %v199_v4, %v198_v2  ;;  %v1706_v11 = vpack.c.bf16 %v185_v6, %v184_v5  ;;  %v234_v18 = vld [vmem:[#allocation5 + $0x480] sm:$0xff] }
  0x74   :  { %1719 = vmatprep.subr.bf16.mxu1 %v1718_v12  ;;  %708 = vmatprep.mubr.f32.mxu1 %v383_v49  ;;  %v168_v12 = vld [vmem:[#allocation5 + $0x270] sm:$0xff]  ;;  %v1738_v16 = vpack.c.bf16 %v217_v8, %v216_v7  ;;  %v201_v17 = vld [vmem:[#allocation5 + $0x378] sm:$0xff]  ;;  %v218_v23 = vld [vmem:[#allocation5 + $0x400] sm:$0xff] }
  0x75   :  { %v200_v15 = vld [vmem:[#allocation5 + $0x370] sm:$0xff]  ;;  %v1708_v22 = vpack.c.bf16 %v169_v14, %v168_v12  ;;  %v219_v26 = vld [vmem:[#allocation5 + $0x408] sm:$0xff]  ;;  %v250_v27 = vld [vmem:[#allocation5 + $0x500] sm:$0xff] }
  0x76   :  { %1689 = vmatpush3.bf16.msra.mxu0 %v1688_v19  ;;  %v235_v19 = vld [vmem:[#allocation5 + $0x488] sm:$0xff]  ;;  %v1740_v24 = vpack.c.bf16 %v201_v17, %v200_v15  ;;  %v236_v30 = vld [vmem:[#allocation5 + $0x490] sm:$0xff]  ;;  %v237_v31 = vld [vmem:[#allocation5 + $0x498] sm:$0xff] }
  0x77   :  { %1721 = vmatpush3.bf16.msra.mxu1 %v1720_v20  ;;  %1691 = vmatprep.subr.bf16.mxu0 %v1690_v21  ;;  %v266_v20 = vld [vmem:[#allocation5 + $0x580] sm:$0xff]  ;;  %v267_v21 = vld [vmem:[#allocation5 + $0x588] sm:$0xff]  ;;  %v269_v34 = vld [vmem:[#allocation5 + $0x598] sm:$0xff]  ;;  %v1746_v38 = vpack.c.bf16 %v237_v31, %v236_v30 }
  0x78   :  { %1723 = vmatprep.subr.bf16.mxu1 %v1722_v25  ;;  %v1742_v25 = vpack.c.bf16 %v235_v19, %v234_v18  ;;  %v251_v28 = vld [vmem:[#allocation5 + $0x508] sm:$0xff]  ;;  %v1774_v29 = vpack.c.bf16 %v267_v21, %v266_v20  ;;  %v88_v37 = vld [vmem:[#allocation2 + $0x10] sm:$0xff]  ;;  %v253_v46 = vld [vmem:[#allocation5 + $0x518] sm:$0xff] }
  0x79   :  { %v220_v39 = vld [vmem:[#allocation5 + $0x410] sm:$0xff]  ;;  %v2184_v42 = vrot.slane %v88_v37, %v2169_v13  ;;  %v384_v43 = vcombine.high %v88_v37, %v88_v37  ;;  %v238_v47 = vld [vmem:[#allocation5 + $0x4a0] sm:$0xff]  ;;  %v223_v57 = vld [vmem:[#allocation5 + $0x428] sm:$0xff] }
  0x7a   :  { %1693 = vmatpush3.bf16.msra.mxu0 %v1692_v32  ;;  %v268_v32 = vld [vmem:[#allocation5 + $0x590] sm:$0xff]  ;;  %v270_v49 = vld [vmem:[#allocation5 + $0x5a0] sm:$0xff]  ;;  %v255_v60 = vld [vmem:[#allocation5 + $0x528] sm:$0xff] }
  0x7b   :  { %1725 = vmatpush3.bf16.msra.mxu1 %v1724_v35  ;;  %1695 = vmatprep.subr.bf16.mxu0 %v1694_v36  ;;  %v1744_v35 = vpack.c.bf16 %v219_v26, %v218_v23  ;;  %v1776_v36 = vpack.c.bf16 %v251_v28, %v250_v27  ;;  %v252_v41 = vld [vmem:[#allocation5 + $0x510] sm:$0xff]  ;;  %v1778_v44 = vpack.c.bf16 %v269_v34, %v268_v32  ;;  %v222_v56 = vld [vmem:[#allocation5 + $0x420] sm:$0xff]  ;;  %v273_v0 = vld [vmem:[#allocation5 + $0x5b8] sm:$0xff] }
  0x7c   :  { %1727 = vmatprep.subr.bf16.mxu1 %v1726_v40  ;;  %v221_v40 = vld [vmem:[#allocation5 + $0x418] sm:$0xff]  ;;  %v2190_v52 = vrot.slane %v384_v43, %v2169_v13  ;;  %v1780_v54 = vpack.c.bf16 %v253_v46, %v252_v41  ;;  %v254_v58 = vld [vmem:[#allocation5 + $0x520] sm:$0xff]  ;;  %v256_v5 = vld [vmem:[#allocation5 + $0x530] sm:$0xff] }
  0x7d   :  { %v1748_v53 = vpack.c.bf16 %v221_v40, %v220_v39  ;;  %v1784_v1 = vpack.c.bf16 %v255_v60, %v254_v58  ;;  %v225_v4 = vld [vmem:[#allocation5 + $0x438] sm:$0xff]  ;;  %v242_v8 = vld [vmem:[#allocation5 + $0x4c0] sm:$0xff]  ;;  %v227_v17 = vld [vmem:[#allocation5 + $0x448] sm:$0xff] }
  0x7e   :  { %1697 = vmatpush3.bf16.msra.mxu0 %v1696_v48  ;;  %v239_v48 = vld [vmem:[#allocation5 + $0x4a8] sm:$0xff]  ;;  %v257_v7 = vld [vmem:[#allocation5 + $0x538] sm:$0xff]  ;;  %v258_v18 = vld [vmem:[#allocation5 + $0x540] sm:$0xff] }
  0x7f   :  { %1729 = vmatpush3.bf16.msra.mxu1 %v1728_v50  ;;  %1699 = vmatprep.subr.bf16.mxu0 %v1698_v51  ;;  %v271_v50 = vld [vmem:[#allocation5 + $0x5a8] sm:$0xff]  ;;  %v399_v51 = vcombine.high %v2184_v42, %v2184_v42  ;;  %v1788_v14 = vpack.c.bf16 %v257_v7, %v256_v5  ;;  %v244_v21 = vld [vmem:[#allocation5 + $0x4d0] sm:$0xff]  ;;  %v261_v32 = vld [vmem:[#allocation5 + $0x558] sm:$0xff] }
  0x80   :  { %1731 = vmatprep.subr.bf16.mxu1 %v1730_v55  ;;  %v1750_v55 = vpack.c.bf16 %v239_v48, %v238_v47  ;;  %v1782_v59 = vpack.c.bf16 %v271_v50, %v270_v49  ;;  %v259_v20 = vld [vmem:[#allocation5 + $0x548] sm:$0xff]  ;;  %v276_v23 = vld [vmem:[#allocation5 + $0x5d0] sm:$0xff]  ;;  %v246_v34 = vld [vmem:[#allocation5 + $0x4e0] sm:$0xff] }
  0x81   :  { %v1792_v26 = vpack.c.bf16 %v259_v20, %v258_v18  ;;  %v228_v28 = vld [vmem:[#allocation5 + $0x450] sm:$0xff]  ;;  %v279_v37 = vld [vmem:[#allocation5 + $0x5e8] sm:$0xff]  ;;  %v230_v41 = vld [vmem:[#allocation5 + $0x460] sm:$0xff] }
  0x82   :  { %1701 = vmatpush3.bf16.msra.mxu0 %v1700_v61  ;;  %v240_v61 = vld [vmem:[#allocation5 + $0x4b0] sm:$0xff]  ;;  %v231_v43 = vld [vmem:[#allocation5 + $0x468] sm:$0xff]  ;;  %v249_v49 = vld [vmem:[#allocation5 + $0x4f8] sm:$0xff] }
  0x83   :  { %1733 = vmatpush3.bf16.msra.mxu1 %v1732_v62  ;;  %1703 = vmatprep.subr.bf16.mxu0 %v1702_v63  ;;  %v241_v62 = vld [vmem:[#allocation5 + $0x4b8] sm:$0xff]  ;;  %v272_v63 = vld [vmem:[#allocation5 + $0x5b0] sm:$0xff]  ;;  %v263_v47 = vld [vmem:[#allocation5 + $0x568] sm:$0xff] }
  0x84   :  { %1735 = vmatprep.subr.bf16.mxu1 %v1734_v3  ;;  %v1754_v2 = vpack.c.bf16 %v241_v62, %v240_v61  ;;  %v224_v3 = vld [vmem:[#allocation5 + $0x430] sm:$0xff]  ;;  %v1786_v6 = vpack.c.bf16 %v273_v0, %v272_v63  ;;  %v233_v58 = vld [vmem:[#allocation5 + $0x478] sm:$0xff]  ;;  %v298_v61 = vld [vmem:[#allocation5 + $0x680] sm:$0xff] }
  0x85   :  { %v1756_v12 = vpack.c.bf16 %v225_v4, %v224_v3  ;;  %v260_v30 = vld [vmem:[#allocation5 + $0x550] sm:$0xff]  ;;  %v265_v60 = vld [vmem:[#allocation5 + $0x578] sm:$0xff]  ;;  %v299_v62 = vld [vmem:[#allocation5 + $0x688] sm:$0xff] }
  0x86   :  { %1705 = vmatpush3.bf16.msra.mxu0 %v1704_v9  ;;  %v243_v9 = vld [vmem:[#allocation5 + $0x4c8] sm:$0xff]  ;;  %v1796_v39 = vpack.c.bf16 %v261_v32, %v260_v30  ;;  %v248_v48 = vld [vmem:[#allocation5 + $0x4f0] sm:$0xff]  ;;  %v330_v63 = vld [vmem:[#allocation5 + $0x780] sm:$0xff]  ;;  %v1806_v3 = vpack.c.bf16 %v299_v62, %v298_v61 }
  0x87   :  { %1737 = vmatpush3.bf16.msra.mxu1 %v1736_v10  ;;  %1707 = vmatprep.subr.bf16.mxu0 %v1706_v11  ;;  %v274_v10 = vld [vmem:[#allocation5 + $0x5c0] sm:$0xff]  ;;  %v275_v11 = vld [vmem:[#allocation5 + $0x5c8] sm:$0xff]  ;;  %v1758_v15 = vpack.c.bf16 %v243_v9, %v242_v8  ;;  %v280_v50 = vld [vmem:[#allocation5 + $0x5f0] sm:$0xff] }
  0x88   :  { %1739 = vmatprep.subr.bf16.mxu1 %v1738_v16  ;;  %v226_v16 = vld [vmem:[#allocation5 + $0x440] sm:$0xff]  ;;  %v1790_v19 = vpack.c.bf16 %v275_v11, %v274_v10  ;;  %v331_v0 = vld [vmem:[#allocation5 + $0x788] sm:$0xff]  ;;  %v300_v9 = vld [vmem:[#allocation5 + $0x690] sm:$0xff] }
  0x89   :  { %v282_v4 = vld [vmem:[#allocation5 + $0x600] sm:$0xff]  ;;  %v283_v5 = vld [vmem:[#allocation5 + $0x608] sm:$0xff]  ;;  %v1838_v7 = vpack.c.bf16 %v331_v0, %v330_v63  ;;  %v301_v10 = vld [vmem:[#allocation5 + $0x698] sm:$0xff] }
  0x8a   :  { %1709 = vmatpush3.bf16.msra.mxu0 %v1708_v22  ;;  %v245_v22 = vld [vmem:[#allocation5 + $0x4d8] sm:$0xff]  ;;  %v315_v8 = vld [vmem:[#allocation5 + $0x708] sm:$0xff]  ;;  %v1810_v18 = vpack.c.bf16 %v301_v10, %v300_v9  ;;  %v286_v32 = vld [vmem:[#allocation5 + $0x620] sm:$0xff] }
  0x8b   :  { %1741 = vmatpush3.bf16.msra.mxu1 %v1740_v24  ;;  %1743 = vmatprep.subr.bf16.mxu0 %v1742_v25  ;;  %v277_v24 = vld [vmem:[#allocation5 + $0x5d8] sm:$0xff]  ;;  %v1760_v25 = vpack.c.bf16 %v227_v17, %v226_v16  ;;  %v1762_v27 = vpack.c.bf16 %v245_v22, %v244_v21  ;;  %v1808_v16 = vpack.c.bf16 %v283_v5, %v282_v4  ;;  %v316_v21 = vld [vmem:[#allocation5 + $0x710] sm:$0xff]  ;;  %v323_v61 = vld [vmem:[#allocation5 + $0x748] sm:$0xff] }
  0x8c   :  { %1775 = vmatprep.subr.bf16.mxu1 %v1774_v29  ;;  %v229_v29 = vld [vmem:[#allocation5 + $0x458] sm:$0xff]  ;;  %v1794_v31 = vpack.c.bf16 %v277_v24, %v276_v23  ;;  %v302_v24 = vld [vmem:[#allocation5 + $0x6a0] sm:$0xff]  ;;  %v308_v62 = vld [vmem:[#allocation5 + $0x6d0] sm:$0xff] }
  0x8d   :  { %639 = vmatmul.mubr.f32.vlgmr.msra.gmra.mrb[2].mxu0 %v2174_v33  ;;  %v400_v33 = vcombine.high %v2190_v52, %v2190_v52  ;;  %v285_v20 = vld [vmem:[#allocation5 + $0x618] sm:$0xff]  ;;  %v340_v0 = vld [vmem:[#allocation5 + $0x7d0] sm:$0xff]  ;;  %v310_v9 = vld [vmem:[#allocation5 + $0x6e0] sm:$0xff] }
  0x8e   :  { %1745 = vmatpush3.bf16.msra.mxu0 %v1744_v35  ;;  %709 = vmatmul.mubr.f32.vlgmr.msra.gmra.mrb[2].mxu1 %v2179_v45  ;;  %v1752_v45 = vpack.c.bf16 %v223_v57, %v222_v56  ;;  %v247_v35 = vld [vmem:[#allocation5 + $0x4e8] sm:$0xff]  ;;  %v1770_v56 = vpack.c.bf16 %v249_v49, %v248_v48  ;;  %v232_v57 = vld [vmem:[#allocation5 + $0x470] sm:$0xff]  ;;  %v317_v23 = vld [vmem:[#allocation5 + $0x718] sm:$0xff] }
  0x8f   :  { %1777 = vmatpush3.bf16.msra.mxu1 %v1776_v36  ;;  %1747 = vmatprep.subr.bf16.mxu0 %v1746_v38  ;;  %v278_v36 = vld [vmem:[#allocation5 + $0x5e0] sm:$0xff]  ;;  %v1764_v38 = vpack.c.bf16 %v229_v29, %v228_v28  ;;  %v1766_v40 = vpack.c.bf16 %v247_v35, %v246_v34  ;;  %v1844_v30 = vpack.c.bf16 %v317_v23, %v316_v21  ;;  %v287_v34 = vld [vmem:[#allocation5 + $0x628] sm:$0xff]  ;;  %v321_v49 = vld [vmem:[#allocation5 + $0x738] sm:$0xff] }
  0x90   :  { %1779 = vmatprep.subr.bf16.mxu1 %v1778_v44  ;;  %778 = vmatprep.mubr.f32.mxu0 %v399_v51  ;;  %v262_v44 = vld [vmem:[#allocation5 + $0x560] sm:$0xff]  ;;  %v1798_v46 = vpack.c.bf16 %v279_v37, %v278_v36  ;;  %v281_v51 = vld [vmem:[#allocation5 + $0x5f8] sm:$0xff]  ;;  %v319_v37 = vld [vmem:[#allocation5 + $0x728] sm:$0xff] }
  0x91   :  { %848 = vmatprep.mubr.f32.mxu1 %v400_v33  ;;  %v264_v33 = vld [vmem:[#allocation5 + $0x570] sm:$0xff]  ;;  %v318_v35 = vld [vmem:[#allocation5 + $0x720] sm:$0xff]  ;;  %v309_v63 = vld [vmem:[#allocation5 + $0x6d8] sm:$0xff] }
  0x92   :  { %1749 = vmatpush3.bf16.msra.mxu0 %v1748_v53  ;;  %v1768_v53 = vpack.c.bf16 %v231_v43, %v230_v41  ;;  %v1816_v41 = vpack.c.bf16 %v287_v34, %v286_v32  ;;  %v292_v4 = vld [vmem:[#allocation5 + $0x650] sm:$0xff]  ;;  %v293_v5 = vld [vmem:[#allocation5 + $0x658] sm:$0xff]  ;;  %v311_v10 = vld [vmem:[#allocation5 + $0x6e8] sm:$0xff] }
  0x93   :  { %1781 = vmatpush3.bf16.msra.mxu1 %v1780_v54  ;;  %1751 = vmatprep.subr.bf16.mxu0 %v1750_v55  ;;  %v89_v54 = vld [vmem:[#allocation2 + $0x18] sm:$0xff]  ;;  %v1800_v55 = vpack.c.bf16 %v263_v47, %v262_v44  ;;  %v288_v44 = vld [vmem:[#allocation5 + $0x630] sm:$0xff]  ;;  %v326_v21 = vld [vmem:[#allocation5 + $0x760] sm:$0xff] }
  0x94   :  { %1783 = vmatprep.subr.bf16.mxu1 %v1782_v59  ;;  %v1802_v59 = vpack.c.bf16 %v281_v51, %v280_v50  ;;  %v2196_v11 = vrot.slane %v89_v54, %v2169_v13  ;;  %v320_v47 = vld [vmem:[#allocation5 + $0x730] sm:$0xff]  ;;  %v306_v50 = vld [vmem:[#allocation5 + $0x6c0] sm:$0xff]  ;;  %v307_v51 = vld [vmem:[#allocation5 + $0x6c8] sm:$0xff] }
  0x95   :  { %v327_v23 = vld [vmem:[#allocation5 + $0x768] sm:$0xff]  ;;  %v328_v34 = vld [vmem:[#allocation5 + $0x770] sm:$0xff] }
  0x96   :  { %1753 = vmatpush3.bf16.msra.mxu0 %v1752_v45  ;;  %v401_v45 = vcombine.high %v89_v54, %v89_v54  ;;  %v339_v54 = vld [vmem:[#allocation5 + $0x7c8] sm:$0xff] }
  0x97   :  { %1785 = vmatpush3.bf16.msra.mxu1 %v1784_v1  ;;  %1755 = vmatprep.subr.bf16.mxu0 %v1754_v2  ;;  %v1772_v1 = vpack.c.bf16 %v233_v58, %v232_v57  ;;  %v1804_v2 = vpack.c.bf16 %v265_v60, %v264_v33  ;;  %v1822_v57 = vpack.c.bf16 %v307_v51, %v306_v50  ;;  %v290_v58 = vld [vmem:[#allocation5 + $0x640] sm:$0xff]  ;;  %v291_v33 = vld [vmem:[#allocation5 + $0x648] sm:$0xff] }
  0x98   :  { %1787 = vmatprep.subr.bf16.mxu1 %v1786_v6  ;;  %v314_v6 = vld [vmem:[#allocation5 + $0x700] sm:$0xff]  ;;  %v1020_v50 = vld [vmem:[#allocation7 + $0x48] sm:$0xff] }
  0x99   :  { %v1840_v17 = vpack.c.bf16 %v315_v8, %v314_v6  ;;  %v324_v6 = vld [vmem:[#allocation5 + $0x750] sm:$0xff]  ;;  %v325_v8 = vld [vmem:[#allocation5 + $0x758] sm:$0xff] }
  0x9a   :  { %1757 = vmatpush3.bf16.msra.mxu0 %v1756_v12  ;;  %v332_v12 = vld [vmem:[#allocation5 + $0x790] sm:$0xff] }
  0x9b   :  { %1789 = vmatpush3.bf16.msra.mxu1 %v1788_v14  ;;  %1759 = vmatprep.subr.bf16.mxu0 %v1758_v15  ;;  %v333_v14 = vld [vmem:[#allocation5 + $0x798] sm:$0xff]  ;;  %v2199_v15 = vrot.slane %v401_v45, %v2169_v13  ;;  %v334_v13 = vld [vmem:[#allocation5 + $0x7a0] sm:$0xff] }
  0x9c   :  { %1791 = vmatprep.subr.bf16.mxu1 %v1790_v19  ;;  %v284_v19 = vld [vmem:[#allocation5 + $0x610] sm:$0xff]  ;;  %v1842_v22 = vpack.c.bf16 %v333_v14, %v332_v12  ;;  %v341_v45 = vld [vmem:[#allocation5 + $0x7d8] sm:$0xff]  ;;  %v342_v12 = vld [vmem:[#allocation5 + $0x7e0] sm:$0xff] }
  0x9d   :  { %v417_v28 = vcombine.high %v2199_v15, %v2199_v15  ;;  %v1812_v29 = vpack.c.bf16 %v285_v20, %v284_v19  ;;  %v343_v14 = vld [vmem:[#allocation5 + $0x7e8] sm:$0xff]  ;;  %v294_v19 = vld [vmem:[#allocation5 + $0x660] sm:$0xff] }
  0x9e   :  { %1761 = vmatpush3.bf16.msra.mxu0 %v1760_v25  ;;  %v303_v25 = vld [vmem:[#allocation5 + $0x6a8] sm:$0xff] }
  0x9f   :  { %1793 = vmatpush3.bf16.msra.mxu1 %v1792_v26  ;;  %1763 = vmatprep.subr.bf16.mxu0 %v1762_v27  ;;  %v416_v26 = vcombine.high %v2196_v11, %v2196_v11  ;;  %v335_v27 = vld [vmem:[#allocation5 + $0x7a8] sm:$0xff] }
  0xa0   :  { %1795 = vmatprep.subr.bf16.mxu1 %v1794_v31  ;;  %v1814_v31 = vpack.c.bf16 %v303_v25, %v302_v24  ;;  %v1846_v36 = vpack.c.bf16 %v335_v27, %v334_v13  ;;  %v295_v20 = vld [vmem:[#allocation5 + $0x668] sm:$0xff]  ;;  %v312_v24 = vld [vmem:[#allocation5 + $0x6f0] sm:$0xff]  ;;  %v313_v25 = vld [vmem:[#allocation5 + $0x6f8] sm:$0xff] }
  0xa1   :  { %v345_v13 = vld [vmem:[#allocation5 + $0x7f8] sm:$0xff]  ;;  %v1832_v27 = vpack.c.bf16 %v295_v20, %v294_v19 }
  0xa2   :  { %1765 = vmatpush3.bf16.msra.mxu0 %v1764_v38  ;;  %v305_v38 = vld [vmem:[#allocation5 + $0x6b8] sm:$0xff] }
  0xa3   :  { %1797 = vmatpush3.bf16.msra.mxu1 %v1796_v39  ;;  %1767 = vmatprep.subr.bf16.mxu0 %v1766_v40  ;;  %v336_v39 = vld [vmem:[#allocation5 + $0x7b0] sm:$0xff]  ;;  %v337_v40 = vld [vmem:[#allocation5 + $0x7b8] sm:$0xff] }
  0xa4   :  { %1799 = vmatprep.subr.bf16.mxu1 %v1798_v46  ;;  %v289_v46 = vld [vmem:[#allocation5 + $0x638] sm:$0xff]  ;;  %v1850_v48 = vpack.c.bf16 %v337_v40, %v336_v39  ;;  %v1013_v39 = vld [vmem:[#allocation7 + $0x10] sm:$0xff]  ;;  %v2058_v40 = vmov 0.0|0.0  }
  0xa6   :  { %1769 = vmatpush3.bf16.msra.mxu0 %v1768_v53  ;;  %v338_v53 = vld [vmem:[#allocation5 + $0x7c0] sm:$0xff] }
  0xa7   :  { %1801 = vmatpush3.bf16.msra.mxu1 %v1800_v55  ;;  %1771 = vmatprep.subr.bf16.mxu0 %v1770_v56  ;;  %v1820_v55 = vpack.c.bf16 %v289_v46, %v288_v44  ;;  %v1852_v56 = vpack.c.bf16 %v321_v49, %v320_v47  ;;  %v1854_v60 = vpack.c.bf16 %v339_v54, %v338_v53  ;;  %v1015_v44 = vld [vmem:[#allocation7 + $0x20] sm:$0xff]  ;;  %v1016_v46 = vld [vmem:[#allocation7 + $0x28] sm:$0xff]  ;;  %v1018_v47 = vld [vmem:[#allocation7 + $0x38] sm:$0xff] }
  0xa8   :  { %1803 = vmatprep.subr.bf16.mxu1 %v1802_v59  ;;  %v322_v59 = vld [vmem:[#allocation5 + $0x740] sm:$0xff]  ;;  %v1021_v53 = vld [vmem:[#allocation7 + $0x50] sm:$0xff]  ;;  %v1022_v54 = vld [vmem:[#allocation7 + $0x58] sm:$0xff] }
  0xa9   :  { %v1019_v49 = vld [vmem:[#allocation7 + $0x40] sm:$0xff] }
  0xaa   :  { %1773 = vmatpush3.bf16.msra.mxu0 %v1772_v1  ;;  %v1824_v1 = vpack.c.bf16 %v291_v33, %v290_v58  ;;  %v1883_v51 = vpack.c.bf16 %v1020_v50, %v1019_v49  ;;  %v1025_v33 = vld [vmem:[#allocation7 + $0x70] sm:$0xff]  ;;  %v1226_v49 = vld [vmem:[%s2254_s2] ss:$0 sm:$0xff] }
  0xab   :  { %1805 = vmatpush3.bf16.msra.mxu1 %v1804_v2  ;;  %1807 = vmatprep.subr.bf16.mxu0 %v1806_v3  ;;  %v1856_v2 = vpack.c.bf16 %v323_v61, %v322_v59  ;;  %v1826_v3 = vpack.c.bf16 %v309_v63, %v308_v62  ;;  %v1026_v59 = vld [vmem:[#allocation7 + $0x78] sm:$0xff]  ;;  %v2060_v61 = vmov 0.0   ;;  %v1114_v62 = vld [vmem:[#allocation8] sm:$0xff]  ;;  %v1115_v63 = vld [vmem:[#allocation8 + $0x8] sm:$0xff] }
  0xac   :  { %1839 = vmatprep.subr.bf16.mxu1 %v1838_v7  ;;  %v1858_v7 = vpack.c.bf16 %v341_v45, %v340_v0  ;;  %v1116_v0 = vld [vmem:[#allocation8 + $0x10] sm:$0xff]  ;;  %v1895_v45 = vpack.c.bf16 %v1115_v63, %v1114_v62 }
  0xad   :  { %779 = vmatmul.mubr.f32.vlgmr.msra.gmra.mrb[4].mxu0 %v2184_v42  ;;  %v304_v42 = vld [vmem:[#allocation5 + $0x6b0] sm:$0xff] }
  0xae   :  { %1809 = vmatpush3.bf16.msra.mxu0 %v1808_v16  ;;  %849 = vmatmul.mubr.f32.vlgmr.msra.gmra.mrb[4].mxu1 %v2190_v52  ;;  %v1848_v52 = vpack.c.bf16 %v319_v37, %v318_v35  ;;  %v1818_v43 = vpack.c.bf16 %v305_v38, %v304_v42  ;;  %v1828_v16 = vpack.c.bf16 %v293_v5, %v292_v4  ;;  %v329_v35 = vld [vmem:[#allocation5 + $0x778] sm:$0xff]  ;;  %v1011_v42 = vld [vmem:[#allocation7] sm:$0xff]  ;;  %v1012_v38 = vld [vmem:[#allocation7 + $0x8] sm:$0xff] }
  0xaf   :  { %1841 = vmatpush3.bf16.msra.mxu1 %v1840_v17  ;;  %1811 = vmatprep.subr.bf16.mxu0 %v1810_v18  ;;  %v1860_v17 = vpack.c.bf16 %v325_v8, %v324_v6  ;;  %v1830_v18 = vpack.c.bf16 %v311_v10, %v310_v9  ;;  %v1868_v37 = vpack.c.bf16 %v329_v35, %v328_v34  ;;  %v1119_v4 = vld [vmem:[#allocation8 + $0x28] sm:$0xff]  ;;  %v1120_v6 = vld [vmem:[#allocation8 + $0x30] sm:$0xff]  ;;  %v1122_v9 = vld [vmem:[#allocation8 + $0x40] sm:$0xff] }
  0xb0   :  { %1843 = vmatprep.subr.bf16.mxu1 %v1842_v22  ;;  %918 = vmatprep.mubr.f32.mxu0 %v416_v26  ;;  %v1862_v22 = vpack.c.bf16 %v343_v14, %v342_v12  ;;  %v344_v26 = vld [vmem:[#allocation5 + $0x7f0] sm:$0xff]  ;;  %v1123_v10 = vld [vmem:[#allocation8 + $0x48] sm:$0xff] }
  0xb1   :  { %988 = vmatprep.mubr.f32.mxu1 %v417_v28  ;;  %v1864_v28 = vpack.c.bf16 %v327_v23, %v326_v21  ;;  %v1866_v32 = vpack.c.bf16 %v345_v13, %v344_v26  ;;  %v1907_v12 = vpack.c.bf16 %v1123_v10, %v1122_v9  ;;  %v1124_v14 = vld [vmem:[#allocation8 + $0x50] sm:$0xff] }
  0xb2   :  { %1813 = vmatpush3.bf16.msra.mxu0 %v1812_v29  ;;  %v1834_v29 = vpack.c.bf16 %v313_v25, %v312_v24 }
  0xb3   :  { %1845 = vmatpush3.bf16.msra.mxu1 %v1844_v30  ;;  %1815 = vmatprep.subr.bf16.mxu0 %v1814_v31  ;;  %v296_v30 = vld [vmem:[#allocation5 + $0x670] sm:$0xff]  ;;  %v297_v31 = vld [vmem:[#allocation5 + $0x678] sm:$0xff] }
  0xb4   :  { %1847 = vmatprep.subr.bf16.mxu1 %v1846_v36  ;;  %v1836_v36 = vpack.c.bf16 %v297_v31, %v296_v30 }
  0xb6   :  { %1817 = vmatpush3.bf16.msra.mxu0 %v1816_v41  ;;  %v1871_v41 = vpack.c.bf16 %v1012_v38, %v1011_v42 }
  0xb7   :  { %1849 = vmatpush3.bf16.msra.mxu1 %v1848_v52  ;;  %1819 = vmatprep.subr.bf16.mxu0 %v1818_v43  ;;  %v1014_v52 = vld [vmem:[#allocation7 + $0x18] sm:$0xff] }
  0xb8   :  { %1851 = vmatprep.subr.bf16.mxu1 %v1850_v48  ;;  %v1874_v43 = vpack.c.bf16 %v1014_v52, %v1013_v39 }
  0xba   :  { %1821 = vmatpush3.bf16.msra.mxu0 %v1820_v55  ;;  %v1886_v55 = vpack.c.bf16 %v1022_v54, %v1021_v53  ;;  %v1126_v54 = vld [vmem:[#allocation8 + $0x60] sm:$0xff] }
  0xbb   :  { %1853 = vmatpush3.bf16.msra.mxu1 %v1852_v56  ;;  %1823 = vmatprep.subr.bf16.mxu0 %v1822_v57  ;;  %v1023_v56 = vld [vmem:[#allocation7 + $0x60] sm:$0xff]  ;;  %v1024_v57 = vld [vmem:[#allocation7 + $0x68] sm:$0xff] }
  0xbc   :  { %1855 = vmatprep.subr.bf16.mxu1 %v1854_v60  ;;  %v1889_v58 = vpack.c.bf16 %v1024_v57, %v1023_v56  ;;  %v1892_v60 = vpack.c.bf16 %v1026_v59, %v1025_v33  ;;  %v1128_v57 = vld [vmem:[#allocation8 + $0x70] sm:$0xff]  ;;  %v1227_v59 = vld [vmem:[%s2258_s6] ss:$0 sm:$0xff]  ;;  %s2021_s6 = scalar_lea.vmem %s1215_s23, 32 }
  0xbd   :  { %p2022_p4 = scmp.ne.s32.totalorder %s1215_s23, %s2021_s6  ;;  %p2027_p6 = scmp.lt.s32.totalorder %s2021_s6, %s2021_s6 }
  0xbe   :  { %1825 = vmatpush3.bf16.msra.mxu0 %v1824_v1  ;;  %v1117_v1 = vld [vmem:[#allocation8 + $0x18] sm:$0xff] }
  0xbf   :  { %1857 = vmatpush3.bf16.msra.mxu1 %v1856_v2  ;;  %1827 = vmatprep.subr.bf16.mxu0 %v1826_v3  ;;  %v1898_v2 = vpack.c.bf16 %v1117_v1, %v1116_v0  ;;  %v1118_v3 = vld [vmem:[#allocation8 + $0x20] sm:$0xff]  ;;  %p2028_p7 = por %p2027_p6, %p2026_p5 }
  0xc0   :  { %1859 = vmatprep.subr.bf16.mxu1 %v1858_v7  ;;  %v1901_v5 = vpack.c.bf16 %v1119_v4, %v1118_v3  ;;  %v1121_v7 = vld [vmem:[#allocation8 + $0x38] sm:$0xff] }
  0xc1   :  { %v1904_v8 = vpack.c.bf16 %v1121_v7, %v1120_v6  ;;  %p2029_p8 = pnand %p2028_p7, %p2022_p4 }
  0xc2   :  { %1829 = vmatpush3.bf16.msra.mxu0 %v1828_v16  ;;  %v1125_v16 = vld [vmem:[#allocation8 + $0x58] sm:$0xff] }
  0xc3   :  { %1861 = vmatpush3.bf16.msra.mxu1 %v1860_v17  ;;  %1831 = vmatprep.subr.bf16.mxu0 %v1830_v18  ;;  %v1910_v20 = vpack.c.bf16 %v1125_v16, %v1124_v14 }
  0xc4   :  { %1863 = vmatprep.subr.bf16.mxu1 %v1862_v22 }
  0xc6   :  { %1833 = vmatpush3.bf16.msra.mxu0 %v1832_v27 }
  0xc7   :  { %1865 = vmatpush3.bf16.msra.mxu1 %v1864_v28  ;;  %1835 = vmatprep.subr.bf16.mxu0 %v1834_v29 }
  0xc8   :  { %1867 = vmatprep.subr.bf16.mxu1 %v1866_v32 }
  0xca   :  { %1837 = vmatpush3.bf16.msra.mxu0 %v1836_v36 }
  0xcb   :  { %1869 = vmatpush3.bf16.msra.mxu1 %v1868_v37  ;;  %1870 = vmatprep.subr.bf16.mxu0 %v2058_v40 }
  0xcc   :  { %1894 = vmatprep.subr.bf16.mxu1 %v2058_v40 }
  0xcd   :  { %919 = vmatmul.mubr.f32.vlgmr.msra.gmra.mrb[6].mxu0 %v2196_v11  ;;  %v1877_v11 = vpack.c.bf16 %v1016_v46, %v1015_v44 }
  0xce   :  { %989 = vmatmul.mubr.f32.vlgmr.msra.gmra.mrb[6].mxu1 %v2199_v15  ;;  %1872 = vmatpush3.bf16.msra.mxu0 %v1871_v41  ;;  %v1017_v15 = vld [vmem:[#allocation7 + $0x30] sm:$0xff] }
  0xcf   :  { %1873 = vmatprep.subr.bf16.mxu0 %v2058_v40  ;;  %v1880_v48 = vpack.c.bf16 %v1018_v47, %v1017_v15  ;;  %1576 = vmatprep.mubr.msk.f32.mxu0 %vm2059_vm0, %v2060_v61  ;;  %v1225_v47 = vld [vmem:[%s2255_s3] ss:$0 sm:$0xff] }
  0xd0   :  { %1611 = vmatprep.mubr.msk.f32.mxu1 %vm2059_vm0, %v2060_v61  ;;  %1896 = vmatpush3.bf16.msra.mxu1 %v1895_v45  ;;  %v1228_v61 = vld [vmem:[%s2257_s5] ss:$0 sm:$0xff] }
  0xd1   :  { %1897 = vmatprep.subr.bf16.mxu1 %v2058_v40 }
  0xd2   :  { %1875 = vmatpush3.bf16.msra.mxu0 %v1874_v43 }
  0xd3   :  { %1876 = vmatprep.subr.bf16.mxu0 %v2058_v40 }
  0xd4   :  { %1899 = vmatpush3.bf16.msra.mxu1 %v1898_v2 }
  0xd5   :  { %1900 = vmatprep.subr.bf16.mxu1 %v2058_v40 }
  0xd6   :  { %1878 = vmatpush3.bf16.msra.mxu0 %v1877_v11 }
  0xd7   :  { %1879 = vmatprep.subr.bf16.mxu0 %v2058_v40 }
  0xd8   :  { %1902 = vmatpush3.bf16.msra.mxu1 %v1901_v5 }
  0xd9   :  { %1903 = vmatprep.subr.bf16.mxu1 %v2058_v40 }
  0xda   :  { %1881 = vmatpush3.bf16.msra.mxu0 %v1880_v48 }
  0xdb   :  { %1882 = vmatprep.subr.bf16.mxu0 %v2058_v40 }
  0xdc   :  { %1905 = vmatpush3.bf16.msra.mxu1 %v1904_v8 }
  0xdd   :  { %1906 = vmatprep.subr.bf16.mxu1 %v2058_v40 }
  0xde   :  { %1884 = vmatpush3.bf16.msra.mxu0 %v1883_v51 }
  0xdf   :  { %1885 = vmatprep.subr.bf16.mxu0 %v2058_v40 }
  0xe0   :  { %1908 = vmatpush3.bf16.msra.mxu1 %v1907_v12 }
  0xe1   :  { %1909 = vmatprep.subr.bf16.mxu1 %v2058_v40 }
  0xe2   :  { %1887 = vmatpush3.bf16.msra.mxu0 %v1886_v55  ;;  %v1127_v55 = vld [vmem:[#allocation8 + $0x68] sm:$0xff] }
  0xe3   :  { %1888 = vmatprep.subr.bf16.mxu0 %v2058_v40  ;;  %v1913_v56 = vpack.c.bf16 %v1127_v55, %v1126_v54 }
  0xe4   :  { %1911 = vmatpush3.bf16.msra.mxu1 %v1910_v20 }
  0xe5   :  { %1912 = vmatprep.subr.bf16.mxu1 %v2058_v40 }
  0xe6   :  { %1890 = vmatpush3.bf16.msra.mxu0 %v1889_v58  ;;  %v1129_v58 = vld [vmem:[#allocation8 + $0x78] sm:$0xff] }
  0xe7   :  { %1891 = vmatprep.subr.bf16.mxu0 %v2058_v40  ;;  %v1916_v33 = vpack.c.bf16 %v1129_v58, %v1128_v57 }
  0xe8   :  { %1914 = vmatpush3.bf16.msra.mxu1 %v1913_v56 }
  0xe9   :  { %1915 = vmatprep.subr.bf16.mxu1 %v2058_v40  ;;  %v1229_v40 = vld [vmem:[%s2260_s8] ss:$0 sm:$0xff] }
  0xea   :  { %1893 = vmatpush3.bf16.msra.mxu0 %v1892_v60 }
  0xec   :  { %1917 = vmatpush3.bf16.msra.mxu1 %v1916_v33 }
 0x140   :  { %v1262_v17 = vpop.f32.mrb[0].mxu0 }
 0x141   :  { %v1297_v18 = vpop.f32.mrb[0].mxu1  ;;  %v1263_v19 = vpop.f32.mrb[1].mxu0 }
 0x142   :  { %v1264_v21 = vadd.f32 %v1263_v19, %v1262_v17  ;;  %v1298_v22 = vpop.f32.mrb[1].mxu1 }
 0x143   :  { %v1299_v23 = vadd.f32 %v1298_v22, %v1297_v18 }
 0x145   :  { %v571_v24 = vadd.f32 %v1299_v23, %v1264_v21 }
 0x160   :  { %v1332_v25 = vpop.f32.mrb[2].mxu0 }
 0x161   :  { %v1333_v26 = vpop.f32.mrb[3].mxu0  ;;  %v1367_v13 = vpop.f32.mrb[2].mxu1 }
 0x162   :  { %v1334_v27 = vadd.f32 %v1333_v26, %v1332_v25  ;;  %v1368_v28 = vpop.f32.mrb[3].mxu1 }
 0x163   :  { %v1369_v29 = vadd.f32 %v1368_v28, %v1367_v13 }
 0x164   :  { %v641_v30 = vadd.f32 %v1334_v27, %v571_v24 }
 0x166   :  { %v711_v31 = vadd.f32 %v1369_v29, %v641_v30 }
 0x180   :  { %v1402_v32 = vpop.f32.mrb[4].mxu0 }
 0x181   :  { %v1403_v34 = vpop.f32.mrb[5].mxu0  ;;  %v1437_v35 = vpop.f32.mrb[4].mxu1 }
 0x182   :  { %v1404_v36 = vadd.f32 %v1403_v34, %v1402_v32  ;;  %v1438_v37 = vpop.f32.mrb[5].mxu1 }
 0x183   :  { %v1439_v42 = vadd.f32 %v1438_v37, %v1437_v35 }
 0x184   :  { %v781_v38 = vadd.f32 %v1404_v36, %v711_v31 }
 0x186   :  { %v851_v39 = vadd.f32 %v1439_v42, %v781_v38 }
 0x1a0   :  { %v1472_v41 = vpop.f32.mrb[6].mxu0 }
 0x1a1   :  { %v1473_v52 = vpop.f32.mrb[7].mxu0  ;;  %v1507_v43 = vpop.f32.mrb[6].mxu1 }
 0x1a2   :  { %v1474_v44 = vadd.f32 %v1473_v52, %v1472_v41  ;;  %v1508_v46 = vpop.f32.mrb[7].mxu1 }
 0x1a3   :  { %v1509_v11 = vadd.f32 %v1508_v46, %v1507_v43 }
 0x1a4   :  { %v921_v15 = vadd.f32 %v1474_v44, %v851_v39 }
 0x1a6   :  { %v991_v48 = vadd.f32 %v1509_v11, %v921_v15 }
 0x1a8   :  { %v1001_v50 = vmul.f32 %v1225_v47, %v991_v48 }
 0x1aa   :  { %v1009_v51 = vadd.f32 %v1226_v49, %v1001_v50 }
 0x1ac   :  { %v1010_v53 = vmax.f32 %v1009_v51, 0.0 }
 0x1ae   :  { %1577 = vmatmul.mubr.f32.vlgmr.msra.gmra.mrb[8].mxu0 %v1010_v53 }
 0x281   :  { %v1093_v60 = vpop.f32.mrb[8].mxu0 }
 0x282   :  { %v1104_v62 = vmul.f32 %v1227_v59, %v1093_v60  ;;  %v1578_v63 = vpop.f32.mrb[9].mxu0 }
 0x284   :  { %v1112_v0 = vadd.f32 %v1228_v61, %v1104_v62 }
 0x286   :  { %v1113_v45 = vmax.f32 %v1112_v0, 0.0 }
 0x288   :  { %1612 = vmatmul.mubr.f32.vlgmr.msra.gmra.mrb[8].mxu1 %v1113_v45 }
 0x35b   :  { %v1203_v1 = vpop.f32.mrb[8].mxu1 }
 0x35c   :  { %v1204_v2 = vadd.f32 %v1229_v40, %v1203_v1  ;;  %v1613_v3 = vpop.f32.mrb[9].mxu1 }
 0x35e   :  { %1207 = vst [vmem:[#allocation10] sm:$0x3] %v1204_v2 }
 0x35f   :  { %2032 = shalt.err (!%p2029_p8)
}
 0x360   :  { %s2033_s0 = scalar_lea.hbm %s2261_s9, 32 }
 0x361   :  { %p2034_p9 = scmp.ne.s32.totalorder %s2261_s9, %s2033_s0  ;;  %p2037_p10 = scmp.lt.u32.totalorder %s2033_s0, %s2261_s9 }
 0x363   :  { %p2039_p11 = pnand %p2037_p10, %p2034_p9 }
 0x365   :  { %2042 = shalt.err (!%p2039_p11)
}
 0x366   :  { %1217 = dma.vmem_to_hbm [thread:$0]  %s1215_s23, 32, %s2261_s9, [#allocation4]  }
 0x367   :  { %2049 = dma.done.wait [#allocation4], 32  }
 0x368   :  { %2050 = vsyncadd [#allocation4], 4294967264 }
 0x369   :  { %1221 = vsyncpa [#allocation3], 1 }
 0x36a   :  { %1222 = vsyncpa [#allocation6], 1 }
 0x36b   :  { %1223 = vsyncpa [#allocation9], 1 }
 0x36c   :  { %1224 = vsyncpa [#allocation4], 1 }

</bundles_post_ra>
